<compile_context>
chip_gen: v6e
topology: v6e:2x2x1
jax: 0.10.0
libtpu: 0.0.40
codegen_flags: <defaults>
</compile_context>

<pallas_src>
import jax
import jax.numpy as jnp
from jax import lax
from jax.experimental import pallas as pl
from jax.experimental.pallas import tpu as pltpu

K = 7            # conv kernel size
PAD = K // 2     # padding = 3 ("same" conv)


def _round_up(x, m):
    return ((x + m - 1) // m) * m


def spatial_1_forward(x1, x2, x3, weight, bias, *, c_block=None):
    """weight: (1, 2, 7, 7), bias: (1,).  Returns (B, 1, H, W) float32."""
    B, C, H, W = x1.shape
    WPAD_IN = _round_up(W + 2 * PAD, 128)    # padded conv-input width (lanes)
    WPAD_OUT = _round_up(W, 128)             # lane-dense output width
    inv_c = 1.0 / float(C)

    # Channel tile: keep 3 inputs x 2 pipeline buffers of (1, cb, H, W) f32
    # well under the scoped-VMEM budget on all of v5e / v6e / v7x.
    if c_block is None:
        budget = 8 * 1024 * 1024
        per_chan = H * W * 4 * 3 * 2          # 3 inputs x 2 buffers, f32
        cb = max(1, min(C, budget // max(per_chan, 1)))
        while C % cb:
            cb -= 1
    else:
        cb = c_block
    n_c = C // cb

    # Flatten weights to 1-D so SMEM padding stays minimal (512 B vs 4 KiB).
    # Layout: taps [0, 49) -> in-ch 0 (Resultant_avg), [49, 98) -> in-ch 1 (max).
    w_flat = weight.reshape(2 * K * K).astype(jnp.float32)
    bias = bias.astype(jnp.float32)

    def kernel(w_ref, b_ref, x1_ref, x2_ref, x3_ref, o_ref,
               sum_acc, max1_acc, max2_acc, max3_acc, avg_pad, max_pad):
        c_idx = pl.program_id(1)
        last_c = pl.num_programs(1) - 1

        x1b = x1_ref[0].astype(jnp.float32)    # (cb, H, W)
        x2b = x2_ref[0].astype(jnp.float32)
        x3b = x3_ref[0].astype(jnp.float32)

        # Per-block reductions (sum is shared across inputs; max is not).
        blk_sum = jnp.sum(x1b, axis=0) + jnp.sum(x2b, axis=0) + jnp.sum(x3b, axis=0)
        blk_m1 = jnp.max(x1b, axis=0)
        blk_m2 = jnp.max(x2b, axis=0)
        blk_m3 = jnp.max(x3b, axis=0)

        @pl.when(c_idx == 0)
        def _init():
            # Seed accumulators from the first block: no zero/-inf fill pass.
            sum_acc[...] = blk_sum
            max1_acc[...] = blk_m1
            max2_acc[...] = blk_m2
            max3_acc[...] = blk_m3

        @pl.when(c_idx > 0)
        def _accumulate():
            sum_acc[...] = sum_acc[...] + blk_sum
            max1_acc[...] = jnp.maximum(max1_acc[...], blk_m1)
            max2_acc[...] = jnp.maximum(max2_acc[...], blk_m2)
            max3_acc[...] = jnp.maximum(max3_acc[...], blk_m3)

        @pl.when(c_idx == last_c)
        def _finalize():
            avg_map = sum_acc[...] * inv_c
            max_map = max1_acc[...] + max2_acc[...] + max3_acc[...]

            # Zero-padded maps in VMEM scratch, rebuilt once per output image.
            # The border is re-zeroed per image (not gated on b == 0) because
            # scratch is per-TensorCore and the batch axis may be sharded.
            avg_pad[...] = jnp.zeros(avg_pad.shape, avg_pad.dtype)
            max_pad[...] = jnp.zeros(max_pad.shape, max_pad.dtype)
            avg_pad[PAD:PAD + H, PAD:PAD + W] = avg_map
            max_pad[PAD:PAD + H, PAD:PAD + W] = max_map

            # 7x7 conv (2 in-ch -> 1 out-ch): per kh load ONE row band, then
            # generate the 7 kw shifts with XLU lane rotations (pltpu.roll).
            acc = jnp.full((H, WPAD_OUT), b_ref[0], jnp.float32)
            for kh in range(K):
                band_a = avg_pad[kh:kh + H, :]      # (H, WPAD_IN)
                band_m = max_pad[kh:kh + H, :]
                for kw in range(K):
                    wa = w_ref[kh * K + kw]             # in-ch 0 = Resultant_avg
                    wm = w_ref[K * K + kh * K + kw]     # in-ch 1 = Resultant_max
                    if kw == 0:
                        sa, sm = band_a, band_m
                    else:
                        # result[:, j] = band[:, j + kw]; wrapped lanes land in
                        # columns >= W and are discarded by the wrapper slice.
                        sa = pltpu.roll(band_a, shift=WPAD_IN - kw, axis=1)
                        sm = pltpu.roll(band_m, shift=WPAD_IN - kw, axis=1)
                    acc = acc + wa * sa[:, :WPAD_OUT] + wm * sm[:, :WPAD_OUT]

            # Lane-dense store: full WPAD_OUT width, valid data in cols [0, W).
            o_ref[0] = jax.nn.sigmoid(acc)

    x_spec = pl.BlockSpec((1, cb, H, W), lambda b, c: (b, c, 0, 0))
    smem_spec = pl.BlockSpec(memory_space=pltpu.MemorySpace.SMEM)

    out_padded = pl.pallas_call(
        kernel,
        out_shape=jax.ShapeDtypeStruct((B, H, WPAD_OUT), jnp.float32),
        grid_spec=pltpu.PrefetchScalarGridSpec(
            num_scalar_prefetch=0,
            grid=(B, n_c),
            in_specs=[smem_spec, smem_spec, x_spec, x_spec, x_spec],
            out_specs=pl.BlockSpec((1, H, WPAD_OUT), lambda b, c: (b, 0, 0)),
            scratch_shapes=[
                pltpu.VMEM((H, W), jnp.float32),                  # running sum
                pltpu.VMEM((H, W), jnp.float32),                  # running max x1
                pltpu.VMEM((H, W), jnp.float32),                  # running max x2
                pltpu.VMEM((H, W), jnp.float32),                  # running max x3
                pltpu.VMEM((H + 2 * PAD, WPAD_IN), jnp.float32),  # padded avg map
                pltpu.VMEM((H + 2 * PAD, WPAD_IN), jnp.float32),  # padded max map
            ],
        ),
        compiler_params=pltpu.CompilerParams(
            dimension_semantics=("parallel", "arbitrary"),
            vmem_limit_bytes=32 * 1024 * 1024),
    )(w_flat, bias, x1, x2, x3)

    # TODO(synk): for very large spatial maps (e.g. 256x256 UNet stages), add an
    # H-tile grid axis with a 3-row halo and/or move the 98-tap MAC onto the
    # MXU as banded matmuls; the (H, WPAD) accumulator here assumes modest H.
    if WPAD_OUT == W:
        return out_padded[:, None, :, :]
    return out_padded[:, None, :, :W]


def _reference(x1, x2, x3, weight, bias):
    """Pure-JAX reference matching the PyTorch forward."""
    def red(x):
        return (jnp.max(x, axis=1, keepdims=True),
                jnp.mean(x, axis=1, keepdims=True))
    m1, a1 = red(x1)
    m2, a2 = red(x2)
    m3, a3 = red(x3)
    result = jnp.concatenate([a1 + a2 + a3, m1 + m2 + m3], axis=1)  # (B,2,H,W)
    out = lax.conv_general_dilated(
        result, weight, window_strides=(1, 1),
        padding=[(PAD, PAD), (PAD, PAD)],
        dimension_numbers=("NCHW", "OIHW", "NCHW"))
    return jax.nn.sigmoid(out + bias.reshape(1, 1, 1, 1))


if __name__ == "__main__":
    key = jax.random.PRNGKey(0)
    k1, k2, k3, kw, kb = jax.random.split(key, 5)

    B, C, H, W = 2, 4, 16, 16
    x1 = jax.random.normal(k1, (B, C, H, W), jnp.float32)
    x2 = jax.random.normal(k2, (B, C, H, W), jnp.float32)
    x3 = jax.random.normal(k3, (B, C, H, W), jnp.float32)

    # Deterministic Conv2d(2, 1, 7) parameters (PyTorch default-style uniform)
    fan_in = 2 * K * K
    bound = 1.0 / jnp.sqrt(fan_in)
    weight = jax.random.uniform(kw, (1, 2, K, K), jnp.float32, -bound, bound)
    bias = jax.random.uniform(kb, (1,), jnp.float32, -bound, bound)

    out = spatial_1_forward(x1, x2, x3, weight, bias)
    out = jax.block_until_ready(out)

    ref = _reference(x1, x2, x3, weight, bias)
    assert out.shape == (B, 1, H, W), out.shape
    assert jnp.allclose(out, ref, atol=1e-5, rtol=1e-5), (
        f"max abs err = {jnp.max(jnp.abs(out - ref))}")

    print("KERNEL_OK")
</pallas_src>

<mosaic_0001>
module attributes {stable_mosaic.version = 11 : i64} {
  func.func @kernel(%arg0: i32, %arg1: i32, %arg2: memref<98xf32, #tpu.memory_space<smem>>, %arg3: memref<1xf32, #tpu.memory_space<smem>>, %arg4: memref<1x4x16x16xf32, #tpu.memory_space<vmem>>, %arg5: memref<1x4x16x16xf32, #tpu.memory_space<vmem>>, %arg6: memref<1x4x16x16xf32, #tpu.memory_space<vmem>>, %arg7: memref<1x16x128xf32, #tpu.memory_space<vmem>>, %arg8: memref<16x16xf32, #tpu.memory_space<vmem>>, %arg9: memref<16x16xf32, #tpu.memory_space<vmem>>, %arg10: memref<16x16xf32, #tpu.memory_space<vmem>>, %arg11: memref<16x16xf32, #tpu.memory_space<vmem>>, %arg12: memref<22x128xf32, #tpu.memory_space<vmem>>, %arg13: memref<22x128xf32, #tpu.memory_space<vmem>>) attributes {dimension_semantics = [#tpu.dimension_semantics<parallel>, #tpu.dimension_semantics<arbitrary>], iteration_bounds = array<i64: 2, 1>, scalar_prefetch = 0 : i64, scratch_operands = 6 : i64, tpu.core_type = #tpu.core_type<tc>, window_params = [{transform_indices = @transform_0, window_bounds = array<i64: 98>}, {transform_indices = @transform_1, window_bounds = array<i64: 1>}, {transform_indices = @transform_2, window_bounds = array<i64: 1, 4, 16, 16>}, {transform_indices = @transform_3, window_bounds = array<i64: 1, 4, 16, 16>}, {transform_indices = @transform_4, window_bounds = array<i64: 1, 4, 16, 16>}, {transform_indices = @transform_5, window_bounds = array<i64: 1, 16, 128>}]} {
    %c0 = arith.constant 0 : index
    %c0_0 = arith.constant 0 : index
    %c0_1 = arith.constant 0 : index
    %c0_2 = arith.constant 0 : index
    %0 = vector.load %arg4[%c0, %c0_0, %c0_1, %c0_2] : memref<1x4x16x16xf32, #tpu.memory_space<vmem>>, vector<1x4x16x16xf32>
    %1 = vector.shape_cast %0 : vector<1x4x16x16xf32> to vector<4x16x16xf32>
    %c0_3 = arith.constant 0 : index
    %c0_4 = arith.constant 0 : index
    %c0_5 = arith.constant 0 : index
    %c0_6 = arith.constant 0 : index
    %2 = vector.load %arg5[%c0_3, %c0_4, %c0_5, %c0_6] : memref<1x4x16x16xf32, #tpu.memory_space<vmem>>, vector<1x4x16x16xf32>
    %3 = vector.shape_cast %2 : vector<1x4x16x16xf32> to vector<4x16x16xf32>
    %c0_7 = arith.constant 0 : index
    %c0_8 = arith.constant 0 : index
    %c0_9 = arith.constant 0 : index
    %c0_10 = arith.constant 0 : index
    %4 = vector.load %arg6[%c0_7, %c0_8, %c0_9, %c0_10] : memref<1x4x16x16xf32, #tpu.memory_space<vmem>>, vector<1x4x16x16xf32>
    %5 = vector.shape_cast %4 : vector<1x4x16x16xf32> to vector<4x16x16xf32>
    %cst = arith.constant dense<0.000000e+00> : vector<16x16xf32>
    %6 = vector.multi_reduction <add>, %1, %cst [0] : vector<4x16x16xf32> to vector<16x16xf32>
    %cst_11 = arith.constant dense<0.000000e+00> : vector<16x16xf32>
    %7 = vector.multi_reduction <add>, %3, %cst_11 [0] : vector<4x16x16xf32> to vector<16x16xf32>
    %8 = arith.addf %6, %7 : vector<16x16xf32>
    %cst_12 = arith.constant dense<0.000000e+00> : vector<16x16xf32>
    %9 = vector.multi_reduction <add>, %5, %cst_12 [0] : vector<4x16x16xf32> to vector<16x16xf32>
    %10 = arith.addf %8, %9 : vector<16x16xf32>
    %cst_13 = arith.constant dense<0xFF800000> : vector<16x16xf32>
    %11 = vector.multi_reduction <maximumf>, %1, %cst_13 [0] : vector<4x16x16xf32> to vector<16x16xf32>
    %cst_14 = arith.constant dense<0xFF800000> : vector<16x16xf32>
    %12 = vector.multi_reduction <maximumf>, %3, %cst_14 [0] : vector<4x16x16xf32> to vector<16x16xf32>
    %cst_15 = arith.constant dense<0xFF800000> : vector<16x16xf32>
    %13 = vector.multi_reduction <maximumf>, %5, %cst_15 [0] : vector<4x16x16xf32> to vector<16x16xf32>
    %c0_i32 = arith.constant 0 : i32
    %14 = arith.cmpi eq, %arg1, %c0_i32 : i32
    %15 = arith.extui %14 : i1 to i32
    %c0_i32_16 = arith.constant 0 : i32
    %16 = arith.cmpi ne, %15, %c0_i32_16 : i32
    scf.if %16 {
      %c0_21 = arith.constant 0 : index
      %c0_22 = arith.constant 0 : index
      %23 = vector.load %arg8[%c0_21, %c0_22] : memref<16x16xf32, #tpu.memory_space<vmem>>, vector<16x16xf32>
      tpu.vector_store %arg8[%c0_21, %c0_22], %10 {strides = array<i32>} : memref<16x16xf32, #tpu.memory_space<vmem>>, vector<16x16xf32>,
      %c0_23 = arith.constant 0 : index
      %c0_24 = arith.constant 0 : index
      %24 = vector.load %arg9[%c0_23, %c0_24] : memref<16x16xf32, #tpu.memory_space<vmem>>, vector<16x16xf32>
      tpu.vector_store %arg9[%c0_23, %c0_24], %11 {strides = array<i32>} : memref<16x16xf32, #tpu.memory_space<vmem>>, vector<16x16xf32>,
      %c0_25 = arith.constant 0 : index
      %c0_26 = arith.constant 0 : index
      %25 = vector.load %arg10[%c0_25, %c0_26] : memref<16x16xf32, #tpu.memory_space<vmem>>, vector<16x16xf32>
      tpu.vector_store %arg10[%c0_25, %c0_26], %12 {strides = array<i32>} : memref<16x16xf32, #tpu.memory_space<vmem>>, vector<16x16xf32>,
      %c0_27 = arith.constant 0 : index
      %c0_28 = arith.constant 0 : index
      %26 = vector.load %arg11[%c0_27, %c0_28] : memref<16x16xf32, #tpu.memory_space<vmem>>, vector<16x16xf32>
      tpu.vector_store %arg11[%c0_27, %c0_28], %13 {strides = array<i32>} : memref<16x16xf32, #tpu.memory_space<vmem>>, vector<16x16xf32>,
    } else {
    }
    %c0_i32_17 = arith.constant 0 : i32
    %17 = arith.cmpi sgt, %arg1, %c0_i32_17 : i32
    %18 = arith.extui %17 : i1 to i32
    %c0_i32_18 = arith.constant 0 : i32
    %19 = arith.cmpi ne, %18, %c0_i32_18 : i32
    scf.if %19 {
      %c0_21 = arith.constant 0 : index
      %c0_22 = arith.constant 0 : index
      %23 = vector.load %arg8[%c0_21, %c0_22] : memref<16x16xf32, #tpu.memory_space<vmem>>, vector<16x16xf32>
      %24 = arith.addf %23, %10 : vector<16x16xf32>
      %c0_23 = arith.constant 0 : index
      %c0_24 = arith.constant 0 : index
      %25 = vector.load %arg8[%c0_23, %c0_24] : memref<16x16xf32, #tpu.memory_space<vmem>>, vector<16x16xf32>
      tpu.vector_store %arg8[%c0_23, %c0_24], %24 {strides = array<i32>} : memref<16x16xf32, #tpu.memory_space<vmem>>, vector<16x16xf32>,
      %c0_25 = arith.constant 0 : index
      %c0_26 = arith.constant 0 : index
      %26 = vector.load %arg9[%c0_25, %c0_26] : memref<16x16xf32, #tpu.memory_space<vmem>>, vector<16x16xf32>
      %27 = arith.maximumf %26, %11 : vector<16x16xf32>
      %c0_27 = arith.constant 0 : index
      %c0_28 = arith.constant 0 : index
      %28 = vector.load %arg9[%c0_27, %c0_28] : memref<16x16xf32, #tpu.memory_space<vmem>>, vector<16x16xf32>
      tpu.vector_store %arg9[%c0_27, %c0_28], %27 {strides = array<i32>} : memref<16x16xf32, #tpu.memory_space<vmem>>, vector<16x16xf32>,
      %c0_29 = arith.constant 0 : index
      %c0_30 = arith.constant 0 : index
      %29 = vector.load %arg10[%c0_29, %c0_30] : memref<16x16xf32, #tpu.memory_space<vmem>>, vector<16x16xf32>
      %30 = arith.maximumf %29, %12 : vector<16x16xf32>
      %c0_31 = arith.constant 0 : index
      %c0_32 = arith.constant 0 : index
      %31 = vector.load %arg10[%c0_31, %c0_32] : memref<16x16xf32, #tpu.memory_space<vmem>>, vector<16x16xf32>
      tpu.vector_store %arg10[%c0_31, %c0_32], %30 {strides = array<i32>} : memref<16x16xf32, #tpu.memory_space<vmem>>, vector<16x16xf32>,
      %c0_33 = arith.constant 0 : index
      %c0_34 = arith.constant 0 : index
      %32 = vector.load %arg11[%c0_33, %c0_34] : memref<16x16xf32, #tpu.memory_space<vmem>>, vector<16x16xf32>
      %33 = arith.maximumf %32, %13 : vector<16x16xf32>
      %c0_35 = arith.constant 0 : index
      %c0_36 = arith.constant 0 : index
      %34 = vector.load %arg11[%c0_35, %c0_36] : memref<16x16xf32, #tpu.memory_space<vmem>>, vector<16x16xf32>
      tpu.vector_store %arg11[%c0_35, %c0_36], %33 {strides = array<i32>} : memref<16x16xf32, #tpu.memory_space<vmem>>, vector<16x16xf32>,
    } else {
    }
    %c0_i32_19 = arith.constant 0 : i32
    %20 = arith.cmpi eq, %arg1, %c0_i32_19 : i32
    %21 = arith.extui %20 : i1 to i32
    %c0_i32_20 = arith.constant 0 : i32
    %22 = arith.cmpi ne, %21, %c0_i32_20 : i32
    scf.if %22 {
      %c0_21 = arith.constant 0 : index
      %c0_22 = arith.constant 0 : index
      %23 = vector.load %arg8[%c0_21, %c0_22] : memref<16x16xf32, #tpu.memory_space<vmem>>, vector<16x16xf32>
      %cst_23 = arith.constant 2.500000e-01 : f32
      %24 = vector.broadcast %cst_23 : f32 to vector<16x16xf32>
      %25 = arith.mulf %23, %24 : vector<16x16xf32>
      %c0_24 = arith.constant 0 : index
      %c0_25 = arith.constant 0 : index
      %26 = vector.load %arg9[%c0_24, %c0_25] : memref<16x16xf32, #tpu.memory_space<vmem>>, vector<16x16xf32>
      %c0_26 = arith.constant 0 : index
      %c0_27 = arith.constant 0 : index
      %27 = vector.load %arg10[%c0_26, %c0_27] : memref<16x16xf32, #tpu.memory_space<vmem>>, vector<16x16xf32>
      %28 = arith.addf %26, %27 : vector<16x16xf32>
      %c0_28 = arith.constant 0 : index
      %c0_29 = arith.constant 0 : index
      %29 = vector.load %arg11[%c0_28, %c0_29] : memref<16x16xf32, #tpu.memory_space<vmem>>, vector<16x16xf32>
      %30 = arith.addf %28, %29 : vector<16x16xf32>
      %cst_30 = arith.constant 0.000000e+00 : f32
      %31 = vector.broadcast %cst_30 : f32 to vector<22x128xf32>
      %c0_31 = arith.constant 0 : index
      %c0_32 = arith.constant 0 : index
      %32 = vector.load %arg12[%c0_31, %c0_32] : memref<22x128xf32, #tpu.memory_space<vmem>>, vector<22x128xf32>
      tpu.vector_store %arg12[%c0_31, %c0_32], %31 {strides = array<i32>} : memref<22x128xf32, #tpu.memory_space<vmem>>, vector<22x128xf32>,
      %cst_33 = arith.constant 0.000000e+00 : f32
      %33 = vector.broadcast %cst_33 : f32 to vector<22x128xf32>
      %c0_34 = arith.constant 0 : index
      %c0_35 = arith.constant 0 : index
      %34 = vector.load %arg13[%c0_34, %c0_35] : memref<22x128xf32, #tpu.memory_space<vmem>>, vector<22x128xf32>
      tpu.vector_store %arg13[%c0_34, %c0_35], %33 {strides = array<i32>} : memref<22x128xf32, #tpu.memory_space<vmem>>, vector<22x128xf32>,
      %c3 = arith.constant 3 : index
      %c3_36 = arith.constant 3 : index
      %35 = vector.load %arg12[%c3, %c3_36] : memref<22x128xf32, #tpu.memory_space<vmem>>, vector<16x16xf32>
      tpu.vector_store %arg12[%c3, %c3_36], %25 {strides = array<i32>} : memref<22x128xf32, #tpu.memory_space<vmem>>, vector<16x16xf32>,
      %c3_37 = arith.constant 3 : index
      %c3_38 = arith.constant 3 : index
      %36 = vector.load %arg13[%c3_37, %c3_38] : memref<22x128xf32, #tpu.memory_space<vmem>>, vector<16x16xf32>
      tpu.vector_store %arg13[%c3_37, %c3_38], %30 {strides = array<i32>} : memref<22x128xf32, #tpu.memory_space<vmem>>, vector<16x16xf32>,
      %c0_39 = arith.constant 0 : index
      %37 = memref.load %arg3[%c0_39] : memref<1xf32, #tpu.memory_space<smem>>
      %38 = vector.broadcast %37 : f32 to vector<16x128xf32>
      %c0_40 = arith.constant 0 : index
      %c0_41 = arith.constant 0 : index
      %39 = vector.load %arg12[%c0_40, %c0_41] : memref<22x128xf32, #tpu.memory_space<vmem>>, vector<16x128xf32>
      %c0_42 = arith.constant 0 : index
      %c0_43 = arith.constant 0 : index
      %40 = vector.load %arg13[%c0_42, %c0_43] : memref<22x128xf32, #tpu.memory_space<vmem>>, vector<16x128xf32>
      %c0_44 = arith.constant 0 : index
      %41 = memref.load %arg2[%c0_44] : memref<98xf32, #tpu.memory_space<smem>>
      %c49 = arith.constant 49 : index
      %42 = memref.load %arg2[%c49] : memref<98xf32, #tpu.memory_space<smem>>
      %43 = vector.broadcast %41 : f32 to vector<16x128xf32>
      %44 = arith.mulf %43, %39 : vector<16x128xf32>
      %45 = arith.addf %38, %44 : vector<16x128xf32>
      %46 = vector.broadcast %42 : f32 to vector<16x128xf32>
      %47 = arith.mulf %46, %40 : vector<16x128xf32>
      %48 = arith.addf %45, %47 : vector<16x128xf32>
      %c1 = arith.constant 1 : index
      %49 = memref.load %arg2[%c1] : memref<98xf32, #tpu.memory_space<smem>>
      %c50 = arith.constant 50 : index
      %50 = memref.load %arg2[%c50] : memref<98xf32, #tpu.memory_space<smem>>
      %c127_i32 = arith.constant 127 : i32
      %51 = tpu.dynamic_rotate %39 by %c127_i32 dim 1 : vector<16x128xf32>, i32 -> vector<16x128xf32>
      %c127_i32_45 = arith.constant 127 : i32
      %52 = tpu.dynamic_rotate %40 by %c127_i32_45 dim 1 : vector<16x128xf32>, i32 -> vector<16x128xf32>
      %53 = vector.broadcast %49 : f32 to vector<16x128xf32>
      %54 = arith.mulf %53, %51 : vector<16x128xf32>
      %55 = arith.addf %48, %54 : vector<16x128xf32>
      %56 = vector.broadcast %50 : f32 to vector<16x128xf32>
      %57 = arith.mulf %56, %52 : vector<16x128xf32>
      %58 = arith.addf %55, %57 : vector<16x128xf32>
      %c2 = arith.constant 2 : index
      %59 = memref.load %arg2[%c2] : memref<98xf32, #tpu.memory_space<smem>>
      %c51 = arith.constant 51 : index
      %60 = memref.load %arg2[%c51] : memref<98xf32, #tpu.memory_space<smem>>
      %c126_i32 = arith.constant 126 : i32
      %61 = tpu.dynamic_rotate %39 by %c126_i32 dim 1 : vector<16x128xf32>, i32 -> vector<16x128xf32>
      %c126_i32_46 = arith.constant 126 : i32
      %62 = tpu.dynamic_rotate %40 by %c126_i32_46 dim 1 : vector<16x128xf32>, i32 -> vector<16x128xf32>
      %63 = vector.broadcast %59 : f32 to vector<16x128xf32>
      %64 = arith.mulf %63, %61 : vector<16x128xf32>
      %65 = arith.addf %58, %64 : vector<16x128xf32>
      %66 = vector.broadcast %60 : f32 to vector<16x128xf32>
      %67 = arith.mulf %66, %62 : vector<16x128xf32>
      %68 = arith.addf %65, %67 : vector<16x128xf32>
      %c3_47 = arith.constant 3 : index
      %69 = memref.load %arg2[%c3_47] : memref<98xf32, #tpu.memory_space<smem>>
      %c52 = arith.constant 52 : index
      %70 = memref.load %arg2[%c52] : memref<98xf32, #tpu.memory_space<smem>>
      %c125_i32 = arith.constant 125 : i32
      %71 = tpu.dynamic_rotate %39 by %c125_i32 dim 1 : vector<16x128xf32>, i32 -> vector<16x128xf32>
      %c125_i32_48 = arith.constant 125 : i32
      %72 = tpu.dynamic_rotate %40 by %c125_i32_48 dim 1 : vector<16x128xf32>, i32 -> vector<16x128xf32>
      %73 = vector.broadcast %69 : f32 to vector<16x128xf32>
      %74 = arith.mulf %73, %71 : vector<16x128xf32>
      %75 = arith.addf %68, %74 : vector<16x128xf32>
      %76 = vector.broadcast %70 : f32 to vector<16x128xf32>
      %77 = arith.mulf %76, %72 : vector<16x128xf32>
      %78 = arith.addf %75, %77 : vector<16x128xf32>
      %c4 = arith.constant 4 : index
      %79 = memref.load %arg2[%c4] : memref<98xf32, #tpu.memory_space<smem>>
      %c53 = arith.constant 53 : index
      %80 = memref.load %arg2[%c53] : memref<98xf32, #tpu.memory_space<smem>>
      %c124_i32 = arith.constant 124 : i32
      %81 = tpu.dynamic_rotate %39 by %c124_i32 dim 1 : vector<16x128xf32>, i32 -> vector<16x128xf32>
      %c124_i32_49 = arith.constant 124 : i32
      %82 = tpu.dynamic_rotate %40 by %c124_i32_49 dim 1 : vector<16x128xf32>, i32 -> vector<16x128xf32>
      %83 = vector.broadcast %79 : f32 to vector<16x128xf32>
      %84 = arith.mulf %83, %81 : vector<16x128xf32>
      %85 = arith.addf %78, %84 : vector<16x128xf32>
      %86 = vector.broadcast %80 : f32 to vector<16x128xf32>
      %87 = arith.mulf %86, %82 : vector<16x128xf32>
      %88 = arith.addf %85, %87 : vector<16x128xf32>
      %c5 = arith.constant 5 : index
      %89 = memref.load %arg2[%c5] : memref<98xf32, #tpu.memory_space<smem>>
      %c54 = arith.constant 54 : index
      %90 = memref.load %arg2[%c54] : memref<98xf32, #tpu.memory_space<smem>>
      %c123_i32 = arith.constant 123 : i32
      %91 = tpu.dynamic_rotate %39 by %c123_i32 dim 1 : vector<16x128xf32>, i32 -> vector<16x128xf32>
      %c123_i32_50 = arith.constant 123 : i32
      %92 = tpu.dynamic_rotate %40 by %c123_i32_50 dim 1 : vector<16x128xf32>, i32 -> vector<16x128xf32>
      %93 = vector.broadcast %89 : f32 to vector<16x128xf32>
      %94 = arith.mulf %93, %91 : vector<16x128xf32>
      %95 = arith.addf %88, %94 : vector<16x128xf32>
      %96 = vector.broadcast %90 : f32 to vector<16x128xf32>
      %97 = arith.mulf %96, %92 : vector<16x128xf32>
      %98 = arith.addf %95, %97 : vector<16x128xf32>
      %c6 = arith.constant 6 : index
      %99 = memref.load %arg2[%c6] : memref<98xf32, #tpu.memory_space<smem>>
      %c55 = arith.constant 55 : index
      %100 = memref.load %arg2[%c55] : memref<98xf32, #tpu.memory_space<smem>>
      %c122_i32 = arith.constant 122 : i32
      %101 = tpu.dynamic_rotate %39 by %c122_i32 dim 1 : vector<16x128xf32>, i32 -> vector<16x128xf32>
      %c122_i32_51 = arith.constant 122 : i32
      %102 = tpu.dynamic_rotate %40 by %c122_i32_51 dim 1 : vector<16x128xf32>, i32 -> vector<16x128xf32>
      %103 = vector.broadcast %99 : f32 to vector<16x128xf32>
      %104 = arith.mulf %103, %101 : vector<16x128xf32>
      %105 = arith.addf %98, %104 : vector<16x128xf32>
      %106 = vector.broadcast %100 : f32 to vector<16x128xf32>
      %107 = arith.mulf %106, %102 : vector<16x128xf32>
      %108 = arith.addf %105, %107 : vector<16x128xf32>
      %c1_52 = arith.constant 1 : index
      %c0_53 = arith.constant 0 : index
      %109 = vector.load %arg12[%c1_52, %c0_53] : memref<22x128xf32, #tpu.memory_space<vmem>>, vector<16x128xf32>
      %c1_54 = arith.constant 1 : index
      %c0_55 = arith.constant 0 : index
      %110 = vector.load %arg13[%c1_54, %c0_55] : memref<22x128xf32, #tpu.memory_space<vmem>>, vector<16x128xf32>
      %c7 = arith.constant 7 : index
      %111 = memref.load %arg2[%c7] : memref<98xf32, #tpu.memory_space<smem>>
      %c56 = arith.constant 56 : index
      %112 = memref.load %arg2[%c56] : memref<98xf32, #tpu.memory_space<smem>>
      %113 = vector.broadcast %111 : f32 to vector<16x128xf32>
      %114 = arith.mulf %113, %109 : vector<16x128xf32>
      %115 = arith.addf %108, %114 : vector<16x128xf32>
      %116 = vector.broadcast %112 : f32 to vector<16x128xf32>
      %117 = arith.mulf %116, %110 : vector<16x128xf32>
      %118 = arith.addf %115, %117 : vector<16x128xf32>
      %c8 = arith.constant 8 : index
      %119 = memref.load %arg2[%c8] : memref<98xf32, #tpu.memory_space<smem>>
      %c57 = arith.constant 57 : index
      %120 = memref.load %arg2[%c57] : memref<98xf32, #tpu.memory_space<smem>>
      %c127_i32_56 = arith.constant 127 : i32
      %121 = tpu.dynamic_rotate %109 by %c127_i32_56 dim 1 : vector<16x128xf32>, i32 -> vector<16x128xf32>
      %c127_i32_57 = arith.constant 127 : i32
      %122 = tpu.dynamic_rotate %110 by %c127_i32_57 dim 1 : vector<16x128xf32>, i32 -> vector<16x128xf32>
      %123 = vector.broadcast %119 : f32 to vector<16x128xf32>
      %124 = arith.mulf %123, %121 : vector<16x128xf32>
      %125 = arith.addf %118, %124 : vector<16x128xf32>
      %126 = vector.broadcast %120 : f32 to vector<16x128xf32>
      %127 = arith.mulf %126, %122 : vector<16x128xf32>
      %128 = arith.addf %125, %127 : vector<16x128xf32>
      %c9 = arith.constant 9 : index
      %129 = memref.load %arg2[%c9] : memref<98xf32, #tpu.memory_space<smem>>
      %c58 = arith.constant 58 : index
      %130 = memref.load %arg2[%c58] : memref<98xf32, #tpu.memory_space<smem>>
      %c126_i32_58 = arith.constant 126 : i32
      %131 = tpu.dynamic_rotate %109 by %c126_i32_58 dim 1 : vector<16x128xf32>, i32 -> vector<16x128xf32>
      %c126_i32_59 = arith.constant 126 : i32
      %132 = tpu.dynamic_rotate %110 by %c126_i32_59 dim 1 : vector<16x128xf32>, i32 -> vector<16x128xf32>
      %133 = vector.broadcast %129 : f32 to vector<16x128xf32>
      %134 = arith.mulf %133, %131 : vector<16x128xf32>
      %135 = arith.addf %128, %134 : vector<16x128xf32>
      %136 = vector.broadcast %130 : f32 to vector<16x128xf32>
      %137 = arith.mulf %136, %132 : vector<16x128xf32>
      %138 = arith.addf %135, %137 : vector<16x128xf32>
      %c10 = arith.constant 10 : index
      %139 = memref.load %arg2[%c10] : memref<98xf32, #tpu.memory_space<smem>>
      %c59 = arith.constant 59 : index
      %140 = memref.load %arg2[%c59] : memref<98xf32, #tpu.memory_space<smem>>
      %c125_i32_60 = arith.constant 125 : i32
      %141 = tpu.dynamic_rotate %109 by %c125_i32_60 dim 1 : vector<16x128xf32>, i32 -> vector<16x128xf32>
      %c125_i32_61 = arith.constant 125 : i32
      %142 = tpu.dynamic_rotate %110 by %c125_i32_61 dim 1 : vector<16x128xf32>, i32 -> vector<16x128xf32>
      %143 = vector.broadcast %139 : f32 to vector<16x128xf32>
      %144 = arith.mulf %143, %141 : vector<16x128xf32>
      %145 = arith.addf %138, %144 : vector<16x128xf32>
      %146 = vector.broadcast %140 : f32 to vector<16x128xf32>
      %147 = arith.mulf %146, %142 : vector<16x128xf32>
      %148 = arith.addf %145, %147 : vector<16x128xf32>
      %c11 = arith.constant 11 : index
      %149 = memref.load %arg2[%c11] : memref<98xf32, #tpu.memory_space<smem>>
      %c60 = arith.constant 60 : index
      %150 = memref.load %arg2[%c60] : memref<98xf32, #tpu.memory_space<smem>>
      %c124_i32_62 = arith.constant 124 : i32
      %151 = tpu.dynamic_rotate %109 by %c124_i32_62 dim 1 : vector<16x128xf32>, i32 -> vector<16x128xf32>
      %c124_i32_63 = arith.constant 124 : i32
      %152 = tpu.dynamic_rotate %110 by %c124_i32_63 dim 1 : vector<16x128xf32>, i32 -> vector<16x128xf32>
      %153 = vector.broadcast %149 : f32 to vector<16x128xf32>
      %154 = arith.mulf %153, %151 : vector<16x128xf32>
      %155 = arith.addf %148, %154 : vector<16x128xf32>
      %156 = vector.broadcast %150 : f32 to vector<16x128xf32>
      %157 = arith.mulf %156, %152 : vector<16x128xf32>
      %158 = arith.addf %155, %157 : vector<16x128xf32>
      %c12 = arith.constant 12 : index
      %159 = memref.load %arg2[%c12] : memref<98xf32, #tpu.memory_space<smem>>
      %c61 = arith.constant 61 : index
      %160 = memref.load %arg2[%c61] : memref<98xf32, #tpu.memory_space<smem>>
      %c123_i32_64 = arith.constant 123 : i32
      %161 = tpu.dynamic_rotate %109 by %c123_i32_64 dim 1 : vector<16x128xf32>, i32 -> vector<16x128xf32>
      %c123_i32_65 = arith.constant 123 : i32
      %162 = tpu.dynamic_rotate %110 by %c123_i32_65 dim 1 : vector<16x128xf32>, i32 -> vector<16x128xf32>
      %163 = vector.broadcast %159 : f32 to vector<16x128xf32>
      %164 = arith.mulf %163, %161 : vector<16x128xf32>
      %165 = arith.addf %158, %164 : vector<16x128xf32>
      %166 = vector.broadcast %160 : f32 to vector<16x128xf32>
      %167 = arith.mulf %166, %162 : vector<16x128xf32>
      %168 = arith.addf %165, %167 : vector<16x128xf32>
      %c13 = arith.constant 13 : index
      %169 = memref.load %arg2[%c13] : memref<98xf32, #tpu.memory_space<smem>>
      %c62 = arith.constant 62 : index
      %170 = memref.load %arg2[%c62] : memref<98xf32, #tpu.memory_space<smem>>
      %c122_i32_66 = arith.constant 122 : i32
      %171 = tpu.dynamic_rotate %109 by %c122_i32_66 dim 1 : vector<16x128xf32>, i32 -> vector<16x128xf32>
      %c122_i32_67 = arith.constant 122 : i32
      %172 = tpu.dynamic_rotate %110 by %c122_i32_67 dim 1 : vector<16x128xf32>, i32 -> vector<16x128xf32>
      %173 = vector.broadcast %169 : f32 to vector<16x128xf32>
      %174 = arith.mulf %173, %171 : vector<16x128xf32>
      %175 = arith.addf %168, %174 : vector<16x128xf32>
      %176 = vector.broadcast %170 : f32 to vector<16x128xf32>
      %177 = arith.mulf %176, %172 : vector<16x128xf32>
      %178 = arith.addf %175, %177 : vector<16x128xf32>
      %c2_68 = arith.constant 2 : index
      %c0_69 = arith.constant 0 : index
      %179 = vector.load %arg12[%c2_68, %c0_69] : memref<22x128xf32, #tpu.memory_space<vmem>>, vector<16x128xf32>
      %c2_70 = arith.constant 2 : index
      %c0_71 = arith.constant 0 : index
      %180 = vector.load %arg13[%c2_70, %c0_71] : memref<22x128xf32, #tpu.memory_space<vmem>>, vector<16x128xf32>
      %c14 = arith.constant 14 : index
      %181 = memref.load %arg2[%c14] : memref<98xf32, #tpu.memory_space<smem>>
      %c63 = arith.constant 63 : index
      %182 = memref.load %arg2[%c63] : memref<98xf32, #tpu.memory_space<smem>>
      %183 = vector.broadcast %181 : f32 to vector<16x128xf32>
      %184 = arith.mulf %183, %179 : vector<16x128xf32>
      %185 = arith.addf %178, %184 : vector<16x128xf32>
      %186 = vector.broadcast %182 : f32 to vector<16x128xf32>
      %187 = arith.mulf %186, %180 : vector<16x128xf32>
      %188 = arith.addf %185, %187 : vector<16x128xf32>
      %c15 = arith.constant 15 : index
      %189 = memref.load %arg2[%c15] : memref<98xf32, #tpu.memory_space<smem>>
      %c64 = arith.constant 64 : index
      %190 = memref.load %arg2[%c64] : memref<98xf32, #tpu.memory_space<smem>>
      %c127_i32_72 = arith.constant 127 : i32
      %191 = tpu.dynamic_rotate %179 by %c127_i32_72 dim 1 : vector<16x128xf32>, i32 -> vector<16x128xf32>
      %c127_i32_73 = arith.constant 127 : i32
      %192 = tpu.dynamic_rotate %180 by %c127_i32_73 dim 1 : vector<16x128xf32>, i32 -> vector<16x128xf32>
      %193 = vector.broadcast %189 : f32 to vector<16x128xf32>
      %194 = arith.mulf %193, %191 : vector<16x128xf32>
      %195 = arith.addf %188, %194 : vector<16x128xf32>
      %196 = vector.broadcast %190 : f32 to vector<16x128xf32>
      %197 = arith.mulf %196, %192 : vector<16x128xf32>
      %198 = arith.addf %195, %197 : vector<16x128xf32>
      %c16 = arith.constant 16 : index
      %199 = memref.load %arg2[%c16] : memref<98xf32, #tpu.memory_space<smem>>
      %c65 = arith.constant 65 : index
      %200 = memref.load %arg2[%c65] : memref<98xf32, #tpu.memory_space<smem>>
      %c126_i32_74 = arith.constant 126 : i32
      %201 = tpu.dynamic_rotate %179 by %c126_i32_74 dim 1 : vector<16x128xf32>, i32 -> vector<16x128xf32>
      %c126_i32_75 = arith.constant 126 : i32
      %202 = tpu.dynamic_rotate %180 by %c126_i32_75 dim 1 : vector<16x128xf32>, i32 -> vector<16x128xf32>
      %203 = vector.broadcast %199 : f32 to vector<16x128xf32>
      %204 = arith.mulf %203, %201 : vector<16x128xf32>
      %205 = arith.addf %198, %204 : vector<16x128xf32>
      %206 = vector.broadcast %200 : f32 to vector<16x128xf32>
      %207 = arith.mulf %206, %202 : vector<16x128xf32>
      %208 = arith.addf %205, %207 : vector<16x128xf32>
      %c17 = arith.constant 17 : index
      %209 = memref.load %arg2[%c17] : memref<98xf32, #tpu.memory_space<smem>>
      %c66 = arith.constant 66 : index
      %210 = memref.load %arg2[%c66] : memref<98xf32, #tpu.memory_space<smem>>
      %c125_i32_76 = arith.constant 125 : i32
      %211 = tpu.dynamic_rotate %179 by %c125_i32_76 dim 1 : vector<16x128xf32>, i32 -> vector<16x128xf32>
      %c125_i32_77 = arith.constant 125 : i32
      %212 = tpu.dynamic_rotate %180 by %c125_i32_77 dim 1 : vector<16x128xf32>, i32 -> vector<16x128xf32>
      %213 = vector.broadcast %209 : f32 to vector<16x128xf32>
      %214 = arith.mulf %213, %211 : vector<16x128xf32>
      %215 = arith.addf %208, %214 : vector<16x128xf32>
      %216 = vector.broadcast %210 : f32 to vector<16x128xf32>
      %217 = arith.mulf %216, %212 : vector<16x128xf32>
      %218 = arith.addf %215, %217 : vector<16x128xf32>
      %c18 = arith.constant 18 : index
      %219 = memref.load %arg2[%c18] : memref<98xf32, #tpu.memory_space<smem>>
      %c67 = arith.constant 67 : index
      %220 = memref.load %arg2[%c67] : memref<98xf32, #tpu.memory_space<smem>>
      %c124_i32_78 = arith.constant 124 : i32
      %221 = tpu.dynamic_rotate %179 by %c124_i32_78 dim 1 : vector<16x128xf32>, i32 -> vector<16x128xf32>
      %c124_i32_79 = arith.constant 124 : i32
      %222 = tpu.dynamic_rotate %180 by %c124_i32_79 dim 1 : vector<16x128xf32>, i32 -> vector<16x128xf32>
      %223 = vector.broadcast %219 : f32 to vector<16x128xf32>
      %224 = arith.mulf %223, %221 : vector<16x128xf32>
      %225 = arith.addf %218, %224 : vector<16x128xf32>
      %226 = vector.broadcast %220 : f32 to vector<16x128xf32>
      %227 = arith.mulf %226, %222 : vector<16x128xf32>
      %228 = arith.addf %225, %227 : vector<16x128xf32>
      %c19 = arith.constant 19 : index
      %229 = memref.load %arg2[%c19] : memref<98xf32, #tpu.memory_space<smem>>
      %c68 = arith.constant 68 : index
      %230 = memref.load %arg2[%c68] : memref<98xf32, #tpu.memory_space<smem>>
      %c123_i32_80 = arith.constant 123 : i32
      %231 = tpu.dynamic_rotate %179 by %c123_i32_80 dim 1 : vector<16x128xf32>, i32 -> vector<16x128xf32>
      %c123_i32_81 = arith.constant 123 : i32
      %232 = tpu.dynamic_rotate %180 by %c123_i32_81 dim 1 : vector<16x128xf32>, i32 -> vector<16x128xf32>
      %233 = vector.broadcast %229 : f32 to vector<16x128xf32>
      %234 = arith.mulf %233, %231 : vector<16x128xf32>
      %235 = arith.addf %228, %234 : vector<16x128xf32>
      %236 = vector.broadcast %230 : f32 to vector<16x128xf32>
      %237 = arith.mulf %236, %232 : vector<16x128xf32>
      %238 = arith.addf %235, %237 : vector<16x128xf32>
      %c20 = arith.constant 20 : index
      %239 = memref.load %arg2[%c20] : memref<98xf32, #tpu.memory_space<smem>>
      %c69 = arith.constant 69 : index
      %240 = memref.load %arg2[%c69] : memref<98xf32, #tpu.memory_space<smem>>
      %c122_i32_82 = arith.constant 122 : i32
      %241 = tpu.dynamic_rotate %179 by %c122_i32_82 dim 1 : vector<16x128xf32>, i32 -> vector<16x128xf32>
      %c122_i32_83 = arith.constant 122 : i32
      %242 = tpu.dynamic_rotate %180 by %c122_i32_83 dim 1 : vector<16x128xf32>, i32 -> vector<16x128xf32>
      %243 = vector.broadcast %239 : f32 to vector<16x128xf32>
      %244 = arith.mulf %243, %241 : vector<16x128xf32>
      %245 = arith.addf %238, %244 : vector<16x128xf32>
      %246 = vector.broadcast %240 : f32 to vector<16x128xf32>
      %247 = arith.mulf %246, %242 : vector<16x128xf32>
      %248 = arith.addf %245, %247 : vector<16x128xf32>
      %c3_84 = arith.constant 3 : index
      %c0_85 = arith.constant 0 : index
      %249 = vector.load %arg12[%c3_84, %c0_85] : memref<22x128xf32, #tpu.memory_space<vmem>>, vector<16x128xf32>
      %c3_86 = arith.constant 3 : index
      %c0_87 = arith.constant 0 : index
      %250 = vector.load %arg13[%c3_86, %c0_87] : memref<22x128xf32, #tpu.memory_space<vmem>>, vector<16x128xf32>
      %c21 = arith.constant 21 : index
      %251 = memref.load %arg2[%c21] : memref<98xf32, #tpu.memory_space<smem>>
      %c70 = arith.constant 70 : index
      %252 = memref.load %arg2[%c70] : memref<98xf32, #tpu.memory_space<smem>>
      %253 = vector.broadcast %251 : f32 to vector<16x128xf32>
      %254 = arith.mulf %253, %249 : vector<16x128xf32>
      %255 = arith.addf %248, %254 : vector<16x128xf32>
      %256 = vector.broadcast %252 : f32 to vector<16x128xf32>
      %257 = arith.mulf %256, %250 : vector<16x128xf32>
      %258 = arith.addf %255, %257 : vector<16x128xf32>
      %c22 = arith.constant 22 : index
      %259 = memref.load %arg2[%c22] : memref<98xf32, #tpu.memory_space<smem>>
      %c71 = arith.constant 71 : index
      %260 = memref.load %arg2[%c71] : memref<98xf32, #tpu.memory_space<smem>>
      %c127_i32_88 = arith.constant 127 : i32
      %261 = tpu.dynamic_rotate %249 by %c127_i32_88 dim 1 : vector<16x128xf32>, i32 -> vector<16x128xf32>
      %c127_i32_89 = arith.constant 127 : i32
      %262 = tpu.dynamic_rotate %250 by %c127_i32_89 dim 1 : vector<16x128xf32>, i32 -> vector<16x128xf32>
      %263 = vector.broadcast %259 : f32 to vector<16x128xf32>
      %264 = arith.mulf %263, %261 : vector<16x128xf32>
      %265 = arith.addf %258, %264 : vector<16x128xf32>
      %266 = vector.broadcast %260 : f32 to vector<16x128xf32>
      %267 = arith.mulf %266, %262 : vector<16x128xf32>
      %268 = arith.addf %265, %267 : vector<16x128xf32>
      %c23 = arith.constant 23 : index
      %269 = memref.load %arg2[%c23] : memref<98xf32, #tpu.memory_space<smem>>
      %c72 = arith.constant 72 : index
      %270 = memref.load %arg2[%c72] : memref<98xf32, #tpu.memory_space<smem>>
      %c126_i32_90 = arith.constant 126 : i32
      %271 = tpu.dynamic_rotate %249 by %c126_i32_90 dim 1 : vector<16x128xf32>, i32 -> vector<16x128xf32>
      %c126_i32_91 = arith.constant 126 : i32
      %272 = tpu.dynamic_rotate %250 by %c126_i32_91 dim 1 : vector<16x128xf32>, i32 -> vector<16x128xf32>
      %273 = vector.broadcast %269 : f32 to vector<16x128xf32>
      %274 = arith.mulf %273, %271 : vector<16x128xf32>
      %275 = arith.addf %268, %274 : vector<16x128xf32>
      %276 = vector.broadcast %270 : f32 to vector<16x128xf32>
      %277 = arith.mulf %276, %272 : vector<16x128xf32>
      %278 = arith.addf %275, %277 : vector<16x128xf32>
      %c24 = arith.constant 24 : index
      %279 = memref.load %arg2[%c24] : memref<98xf32, #tpu.memory_space<smem>>
      %c73 = arith.constant 73 : index
      %280 = memref.load %arg2[%c73] : memref<98xf32, #tpu.memory_space<smem>>
      %c125_i32_92 = arith.constant 125 : i32
      %281 = tpu.dynamic_rotate %249 by %c125_i32_92 dim 1 : vector<16x128xf32>, i32 -> vector<16x128xf32>
      %c125_i32_93 = arith.constant 125 : i32
      %282 = tpu.dynamic_rotate %250 by %c125_i32_93 dim 1 : vector<16x128xf32>, i32 -> vector<16x128xf32>
      %283 = vector.broadcast %279 : f32 to vector<16x128xf32>
      %284 = arith.mulf %283, %281 : vector<16x128xf32>
      %285 = arith.addf %278, %284 : vector<16x128xf32>
      %286 = vector.broadcast %280 : f32 to vector<16x128xf32>
      %287 = arith.mulf %286, %282 : vector<16x128xf32>
      %288 = arith.addf %285, %287 : vector<16x128xf32>
      %c25 = arith.constant 25 : index
      %289 = memref.load %arg2[%c25] : memref<98xf32, #tpu.memory_space<smem>>
      %c74 = arith.constant 74 : index
      %290 = memref.load %arg2[%c74] : memref<98xf32, #tpu.memory_space<smem>>
      %c124_i32_94 = arith.constant 124 : i32
      %291 = tpu.dynamic_rotate %249 by %c124_i32_94 dim 1 : vector<16x128xf32>, i32 -> vector<16x128xf32>
      %c124_i32_95 = arith.constant 124 : i32
      %292 = tpu.dynamic_rotate %250 by %c124_i32_95 dim 1 : vector<16x128xf32>, i32 -> vector<16x128xf32>
      %293 = vector.broadcast %289 : f32 to vector<16x128xf32>
      %294 = arith.mulf %293, %291 : vector<16x128xf32>
      %295 = arith.addf %288, %294 : vector<16x128xf32>
      %296 = vector.broadcast %290 : f32 to vector<16x128xf32>
      %297 = arith.mulf %296, %292 : vector<16x128xf32>
      %298 = arith.addf %295, %297 : vector<16x128xf32>
      %c26 = arith.constant 26 : index
      %299 = memref.load %arg2[%c26] : memref<98xf32, #tpu.memory_space<smem>>
      %c75 = arith.constant 75 : index
      %300 = memref.load %arg2[%c75] : memref<98xf32, #tpu.memory_space<smem>>
      %c123_i32_96 = arith.constant 123 : i32
      %301 = tpu.dynamic_rotate %249 by %c123_i32_96 dim 1 : vector<16x128xf32>, i32 -> vector<16x128xf32>
      %c123_i32_97 = arith.constant 123 : i32
      %302 = tpu.dynamic_rotate %250 by %c123_i32_97 dim 1 : vector<16x128xf32>, i32 -> vector<16x128xf32>
      %303 = vector.broadcast %299 : f32 to vector<16x128xf32>
      %304 = arith.mulf %303, %301 : vector<16x128xf32>
      %305 = arith.addf %298, %304 : vector<16x128xf32>
      %306 = vector.broadcast %300 : f32 to vector<16x128xf32>
      %307 = arith.mulf %306, %302 : vector<16x128xf32>
      %308 = arith.addf %305, %307 : vector<16x128xf32>
      %c27 = arith.constant 27 : index
      %309 = memref.load %arg2[%c27] : memref<98xf32, #tpu.memory_space<smem>>
      %c76 = arith.constant 76 : index
      %310 = memref.load %arg2[%c76] : memref<98xf32, #tpu.memory_space<smem>>
      %c122_i32_98 = arith.constant 122 : i32
      %311 = tpu.dynamic_rotate %249 by %c122_i32_98 dim 1 : vector<16x128xf32>, i32 -> vector<16x128xf32>
      %c122_i32_99 = arith.constant 122 : i32
      %312 = tpu.dynamic_rotate %250 by %c122_i32_99 dim 1 : vector<16x128xf32>, i32 -> vector<16x128xf32>
      %313 = vector.broadcast %309 : f32 to vector<16x128xf32>
      %314 = arith.mulf %313, %311 : vector<16x128xf32>
      %315 = arith.addf %308, %314 : vector<16x128xf32>
      %316 = vector.broadcast %310 : f32 to vector<16x128xf32>
      %317 = arith.mulf %316, %312 : vector<16x128xf32>
      %318 = arith.addf %315, %317 : vector<16x128xf32>
      %c4_100 = arith.constant 4 : index
      %c0_101 = arith.constant 0 : index
      %319 = vector.load %arg12[%c4_100, %c0_101] : memref<22x128xf32, #tpu.memory_space<vmem>>, vector<16x128xf32>
      %c4_102 = arith.constant 4 : index
      %c0_103 = arith.constant 0 : index
      %320 = vector.load %arg13[%c4_102, %c0_103] : memref<22x128xf32, #tpu.memory_space<vmem>>, vector<16x128xf32>
      %c28 = arith.constant 28 : index
      %321 = memref.load %arg2[%c28] : memref<98xf32, #tpu.memory_space<smem>>
      %c77 = arith.constant 77 : index
      %322 = memref.load %arg2[%c77] : memref<98xf32, #tpu.memory_space<smem>>
      %323 = vector.broadcast %321 : f32 to vector<16x128xf32>
      %324 = arith.mulf %323, %319 : vector<16x128xf32>
      %325 = arith.addf %318, %324 : vector<16x128xf32>
      %326 = vector.broadcast %322 : f32 to vector<16x128xf32>
      %327 = arith.mulf %326, %320 : vector<16x128xf32>
      %328 = arith.addf %325, %327 : vector<16x128xf32>
      %c29 = arith.constant 29 : index
      %329 = memref.load %arg2[%c29] : memref<98xf32, #tpu.memory_space<smem>>
      %c78 = arith.constant 78 : index
      %330 = memref.load %arg2[%c78] : memref<98xf32, #tpu.memory_space<smem>>
      %c127_i32_104 = arith.constant 127 : i32
      %331 = tpu.dynamic_rotate %319 by %c127_i32_104 dim 1 : vector<16x128xf32>, i32 -> vector<16x128xf32>
      %c127_i32_105 = arith.constant 127 : i32
      %332 = tpu.dynamic_rotate %320 by %c127_i32_105 dim 1 : vector<16x128xf32>, i32 -> vector<16x128xf32>
      %333 = vector.broadcast %329 : f32 to vector<16x128xf32>
      %334 = arith.mulf %333, %331 : vector<16x128xf32>
      %335 = arith.addf %328, %334 : vector<16x128xf32>
      %336 = vector.broadcast %330 : f32 to vector<16x128xf32>
      %337 = arith.mulf %336, %332 : vector<16x128xf32>
      %338 = arith.addf %335, %337 : vector<16x128xf32>
      %c30 = arith.constant 30 : index
      %339 = memref.load %arg2[%c30] : memref<98xf32, #tpu.memory_space<smem>>
      %c79 = arith.constant 79 : index
      %340 = memref.load %arg2[%c79] : memref<98xf32, #tpu.memory_space<smem>>
      %c126_i32_106 = arith.constant 126 : i32
      %341 = tpu.dynamic_rotate %319 by %c126_i32_106 dim 1 : vector<16x128xf32>, i32 -> vector<16x128xf32>
      %c126_i32_107 = arith.constant 126 : i32
      %342 = tpu.dynamic_rotate %320 by %c126_i32_107 dim 1 : vector<16x128xf32>, i32 -> vector<16x128xf32>
      %343 = vector.broadcast %339 : f32 to vector<16x128xf32>
      %344 = arith.mulf %343, %341 : vector<16x128xf32>
      %345 = arith.addf %338, %344 : vector<16x128xf32>
      %346 = vector.broadcast %340 : f32 to vector<16x128xf32>
      %347 = arith.mulf %346, %342 : vector<16x128xf32>
      %348 = arith.addf %345, %347 : vector<16x128xf32>
      %c31 = arith.constant 31 : index
      %349 = memref.load %arg2[%c31] : memref<98xf32, #tpu.memory_space<smem>>
      %c80 = arith.constant 80 : index
      %350 = memref.load %arg2[%c80] : memref<98xf32, #tpu.memory_space<smem>>
      %c125_i32_108 = arith.constant 125 : i32
      %351 = tpu.dynamic_rotate %319 by %c125_i32_108 dim 1 : vector<16x128xf32>, i32 -> vector<16x128xf32>
      %c125_i32_109 = arith.constant 125 : i32
      %352 = tpu.dynamic_rotate %320 by %c125_i32_109 dim 1 : vector<16x128xf32>, i32 -> vector<16x128xf32>
      %353 = vector.broadcast %349 : f32 to vector<16x128xf32>
      %354 = arith.mulf %353, %351 : vector<16x128xf32>
      %355 = arith.addf %348, %354 : vector<16x128xf32>
      %356 = vector.broadcast %350 : f32 to vector<16x128xf32>
      %357 = arith.mulf %356, %352 : vector<16x128xf32>
      %358 = arith.addf %355, %357 : vector<16x128xf32>
      %c32 = arith.constant 32 : index
      %359 = memref.load %arg2[%c32] : memref<98xf32, #tpu.memory_space<smem>>
      %c81 = arith.constant 81 : index
      %360 = memref.load %arg2[%c81] : memref<98xf32, #tpu.memory_space<smem>>
      %c124_i32_110 = arith.constant 124 : i32
      %361 = tpu.dynamic_rotate %319 by %c124_i32_110 dim 1 : vector<16x128xf32>, i32 -> vector<16x128xf32>
      %c124_i32_111 = arith.constant 124 : i32
      %362 = tpu.dynamic_rotate %320 by %c124_i32_111 dim 1 : vector<16x128xf32>, i32 -> vector<16x128xf32>
      %363 = vector.broadcast %359 : f32 to vector<16x128xf32>
      %364 = arith.mulf %363, %361 : vector<16x128xf32>
      %365 = arith.addf %358, %364 : vector<16x128xf32>
      %366 = vector.broadcast %360 : f32 to vector<16x128xf32>
      %367 = arith.mulf %366, %362 : vector<16x128xf32>
      %368 = arith.addf %365, %367 : vector<16x128xf32>
      %c33 = arith.constant 33 : index
      %369 = memref.load %arg2[%c33] : memref<98xf32, #tpu.memory_space<smem>>
      %c82 = arith.constant 82 : index
      %370 = memref.load %arg2[%c82] : memref<98xf32, #tpu.memory_space<smem>>
      %c123_i32_112 = arith.constant 123 : i32
      %371 = tpu.dynamic_rotate %319 by %c123_i32_112 dim 1 : vector<16x128xf32>, i32 -> vector<16x128xf32>
      %c123_i32_113 = arith.constant 123 : i32
      %372 = tpu.dynamic_rotate %320 by %c123_i32_113 dim 1 : vector<16x128xf32>, i32 -> vector<16x128xf32>
      %373 = vector.broadcast %369 : f32 to vector<16x128xf32>
      %374 = arith.mulf %373, %371 : vector<16x128xf32>
      %375 = arith.addf %368, %374 : vector<16x128xf32>
      %376 = vector.broadcast %370 : f32 to vector<16x128xf32>
      %377 = arith.mulf %376, %372 : vector<16x128xf32>
      %378 = arith.addf %375, %377 : vector<16x128xf32>
      %c34 = arith.constant 34 : index
      %379 = memref.load %arg2[%c34] : memref<98xf32, #tpu.memory_space<smem>>
      %c83 = arith.constant 83 : index
      %380 = memref.load %arg2[%c83] : memref<98xf32, #tpu.memory_space<smem>>
      %c122_i32_114 = arith.constant 122 : i32
      %381 = tpu.dynamic_rotate %319 by %c122_i32_114 dim 1 : vector<16x128xf32>, i32 -> vector<16x128xf32>
      %c122_i32_115 = arith.constant 122 : i32
      %382 = tpu.dynamic_rotate %320 by %c122_i32_115 dim 1 : vector<16x128xf32>, i32 -> vector<16x128xf32>
      %383 = vector.broadcast %379 : f32 to vector<16x128xf32>
      %384 = arith.mulf %383, %381 : vector<16x128xf32>
      %385 = arith.addf %378, %384 : vector<16x128xf32>
      %386 = vector.broadcast %380 : f32 to vector<16x128xf32>
      %387 = arith.mulf %386, %382 : vector<16x128xf32>
      %388 = arith.addf %385, %387 : vector<16x128xf32>
      %c5_116 = arith.constant 5 : index
      %c0_117 = arith.constant 0 : index
      %389 = vector.load %arg12[%c5_116, %c0_117] : memref<22x128xf32, #tpu.memory_space<vmem>>, vector<16x128xf32>
      %c5_118 = arith.constant 5 : index
      %c0_119 = arith.constant 0 : index
      %390 = vector.load %arg13[%c5_118, %c0_119] : memref<22x128xf32, #tpu.memory_space<vmem>>, vector<16x128xf32>
      %c35 = arith.constant 35 : index
      %391 = memref.load %arg2[%c35] : memref<98xf32, #tpu.memory_space<smem>>
      %c84 = arith.constant 84 : index
      %392 = memref.load %arg2[%c84] : memref<98xf32, #tpu.memory_space<smem>>
      %393 = vector.broadcast %391 : f32 to vector<16x128xf32>
      %394 = arith.mulf %393, %389 : vector<16x128xf32>
      %395 = arith.addf %388, %394 : vector<16x128xf32>
      %396 = vector.broadcast %392 : f32 to vector<16x128xf32>
      %397 = arith.mulf %396, %390 : vector<16x128xf32>
      %398 = arith.addf %395, %397 : vector<16x128xf32>
      %c36 = arith.constant 36 : index
      %399 = memref.load %arg2[%c36] : memref<98xf32, #tpu.memory_space<smem>>
      %c85 = arith.constant 85 : index
      %400 = memref.load %arg2[%c85] : memref<98xf32, #tpu.memory_space<smem>>
      %c127_i32_120 = arith.constant 127 : i32
      %401 = tpu.dynamic_rotate %389 by %c127_i32_120 dim 1 : vector<16x128xf32>, i32 -> vector<16x128xf32>
      %c127_i32_121 = arith.constant 127 : i32
      %402 = tpu.dynamic_rotate %390 by %c127_i32_121 dim 1 : vector<16x128xf32>, i32 -> vector<16x128xf32>
      %403 = vector.broadcast %399 : f32 to vector<16x128xf32>
      %404 = arith.mulf %403, %401 : vector<16x128xf32>
      %405 = arith.addf %398, %404 : vector<16x128xf32>
      %406 = vector.broadcast %400 : f32 to vector<16x128xf32>
      %407 = arith.mulf %406, %402 : vector<16x128xf32>
      %408 = arith.addf %405, %407 : vector<16x128xf32>
      %c37 = arith.constant 37 : index
      %409 = memref.load %arg2[%c37] : memref<98xf32, #tpu.memory_space<smem>>
      %c86 = arith.constant 86 : index
      %410 = memref.load %arg2[%c86] : memref<98xf32, #tpu.memory_space<smem>>
      %c126_i32_122 = arith.constant 126 : i32
      %411 = tpu.dynamic_rotate %389 by %c126_i32_122 dim 1 : vector<16x128xf32>, i32 -> vector<16x128xf32>
      %c126_i32_123 = arith.constant 126 : i32
      %412 = tpu.dynamic_rotate %390 by %c126_i32_123 dim 1 : vector<16x128xf32>, i32 -> vector<16x128xf32>
      %413 = vector.broadcast %409 : f32 to vector<16x128xf32>
      %414 = arith.mulf %413, %411 : vector<16x128xf32>
      %415 = arith.addf %408, %414 : vector<16x128xf32>
      %416 = vector.broadcast %410 : f32 to vector<16x128xf32>
      %417 = arith.mulf %416, %412 : vector<16x128xf32>
      %418 = arith.addf %415, %417 : vector<16x128xf32>
      %c38 = arith.constant 38 : index
      %419 = memref.load %arg2[%c38] : memref<98xf32, #tpu.memory_space<smem>>
      %c87 = arith.constant 87 : index
      %420 = memref.load %arg2[%c87] : memref<98xf32, #tpu.memory_space<smem>>
      %c125_i32_124 = arith.constant 125 : i32
      %421 = tpu.dynamic_rotate %389 by %c125_i32_124 dim 1 : vector<16x128xf32>, i32 -> vector<16x128xf32>
      %c125_i32_125 = arith.constant 125 : i32
      %422 = tpu.dynamic_rotate %390 by %c125_i32_125 dim 1 : vector<16x128xf32>, i32 -> vector<16x128xf32>
      %423 = vector.broadcast %419 : f32 to vector<16x128xf32>
      %424 = arith.mulf %423, %421 : vector<16x128xf32>
      %425 = arith.addf %418, %424 : vector<16x128xf32>
      %426 = vector.broadcast %420 : f32 to vector<16x128xf32>
      %427 = arith.mulf %426, %422 : vector<16x128xf32>
      %428 = arith.addf %425, %427 : vector<16x128xf32>
      %c39 = arith.constant 39 : index
      %429 = memref.load %arg2[%c39] : memref<98xf32, #tpu.memory_space<smem>>
      %c88 = arith.constant 88 : index
      %430 = memref.load %arg2[%c88] : memref<98xf32, #tpu.memory_space<smem>>
      %c124_i32_126 = arith.constant 124 : i32
      %431 = tpu.dynamic_rotate %389 by %c124_i32_126 dim 1 : vector<16x128xf32>, i32 -> vector<16x128xf32>
      %c124_i32_127 = arith.constant 124 : i32
      %432 = tpu.dynamic_rotate %390 by %c124_i32_127 dim 1 : vector<16x128xf32>, i32 -> vector<16x128xf32>
      %433 = vector.broadcast %429 : f32 to vector<16x128xf32>
      %434 = arith.mulf %433, %431 : vector<16x128xf32>
      %435 = arith.addf %428, %434 : vector<16x128xf32>
      %436 = vector.broadcast %430 : f32 to vector<16x128xf32>
      %437 = arith.mulf %436, %432 : vector<16x128xf32>
      %438 = arith.addf %435, %437 : vector<16x128xf32>
      %c40 = arith.constant 40 : index
      %439 = memref.load %arg2[%c40] : memref<98xf32, #tpu.memory_space<smem>>
      %c89 = arith.constant 89 : index
      %440 = memref.load %arg2[%c89] : memref<98xf32, #tpu.memory_space<smem>>
      %c123_i32_128 = arith.constant 123 : i32
      %441 = tpu.dynamic_rotate %389 by %c123_i32_128 dim 1 : vector<16x128xf32>, i32 -> vector<16x128xf32>
      %c123_i32_129 = arith.constant 123 : i32
      %442 = tpu.dynamic_rotate %390 by %c123_i32_129 dim 1 : vector<16x128xf32>, i32 -> vector<16x128xf32>
      %443 = vector.broadcast %439 : f32 to vector<16x128xf32>
      %444 = arith.mulf %443, %441 : vector<16x128xf32>
      %445 = arith.addf %438, %444 : vector<16x128xf32>
      %446 = vector.broadcast %440 : f32 to vector<16x128xf32>
      %447 = arith.mulf %446, %442 : vector<16x128xf32>
      %448 = arith.addf %445, %447 : vector<16x128xf32>
      %c41 = arith.constant 41 : index
      %449 = memref.load %arg2[%c41] : memref<98xf32, #tpu.memory_space<smem>>
      %c90 = arith.constant 90 : index
      %450 = memref.load %arg2[%c90] : memref<98xf32, #tpu.memory_space<smem>>
      %c122_i32_130 = arith.constant 122 : i32
      %451 = tpu.dynamic_rotate %389 by %c122_i32_130 dim 1 : vector<16x128xf32>, i32 -> vector<16x128xf32>
      %c122_i32_131 = arith.constant 122 : i32
      %452 = tpu.dynamic_rotate %390 by %c122_i32_131 dim 1 : vector<16x128xf32>, i32 -> vector<16x128xf32>
      %453 = vector.broadcast %449 : f32 to vector<16x128xf32>
      %454 = arith.mulf %453, %451 : vector<16x128xf32>
      %455 = arith.addf %448, %454 : vector<16x128xf32>
      %456 = vector.broadcast %450 : f32 to vector<16x128xf32>
      %457 = arith.mulf %456, %452 : vector<16x128xf32>
      %458 = arith.addf %455, %457 : vector<16x128xf32>
      %c6_132 = arith.constant 6 : index
      %c0_133 = arith.constant 0 : index
      %459 = vector.load %arg12[%c6_132, %c0_133] : memref<22x128xf32, #tpu.memory_space<vmem>>, vector<16x128xf32>
      %c6_134 = arith.constant 6 : index
      %c0_135 = arith.constant 0 : index
      %460 = vector.load %arg13[%c6_134, %c0_135] : memref<22x128xf32, #tpu.memory_space<vmem>>, vector<16x128xf32>
      %c42 = arith.constant 42 : index
      %461 = memref.load %arg2[%c42] : memref<98xf32, #tpu.memory_space<smem>>
      %c91 = arith.constant 91 : index
      %462 = memref.load %arg2[%c91] : memref<98xf32, #tpu.memory_space<smem>>
      %463 = vector.broadcast %461 : f32 to vector<16x128xf32>
      %464 = arith.mulf %463, %459 : vector<16x128xf32>
      %465 = arith.addf %458, %464 : vector<16x128xf32>
      %466 = vector.broadcast %462 : f32 to vector<16x128xf32>
      %467 = arith.mulf %466, %460 : vector<16x128xf32>
      %468 = arith.addf %465, %467 : vector<16x128xf32>
      %c43 = arith.constant 43 : index
      %469 = memref.load %arg2[%c43] : memref<98xf32, #tpu.memory_space<smem>>
      %c92 = arith.constant 92 : index
      %470 = memref.load %arg2[%c92] : memref<98xf32, #tpu.memory_space<smem>>
      %c127_i32_136 = arith.constant 127 : i32
      %471 = tpu.dynamic_rotate %459 by %c127_i32_136 dim 1 : vector<16x128xf32>, i32 -> vector<16x128xf32>
      %c127_i32_137 = arith.constant 127 : i32
      %472 = tpu.dynamic_rotate %460 by %c127_i32_137 dim 1 : vector<16x128xf32>, i32 -> vector<16x128xf32>
      %473 = vector.broadcast %469 : f32 to vector<16x128xf32>
      %474 = arith.mulf %473, %471 : vector<16x128xf32>
      %475 = arith.addf %468, %474 : vector<16x128xf32>
      %476 = vector.broadcast %470 : f32 to vector<16x128xf32>
      %477 = arith.mulf %476, %472 : vector<16x128xf32>
      %478 = arith.addf %475, %477 : vector<16x128xf32>
      %c44 = arith.constant 44 : index
      %479 = memref.load %arg2[%c44] : memref<98xf32, #tpu.memory_space<smem>>
      %c93 = arith.constant 93 : index
      %480 = memref.load %arg2[%c93] : memref<98xf32, #tpu.memory_space<smem>>
      %c126_i32_138 = arith.constant 126 : i32
      %481 = tpu.dynamic_rotate %459 by %c126_i32_138 dim 1 : vector<16x128xf32>, i32 -> vector<16x128xf32>
      %c126_i32_139 = arith.constant 126 : i32
      %482 = tpu.dynamic_rotate %460 by %c126_i32_139 dim 1 : vector<16x128xf32>, i32 -> vector<16x128xf32>
      %483 = vector.broadcast %479 : f32 to vector<16x128xf32>
      %484 = arith.mulf %483, %481 : vector<16x128xf32>
      %485 = arith.addf %478, %484 : vector<16x128xf32>
      %486 = vector.broadcast %480 : f32 to vector<16x128xf32>
      %487 = arith.mulf %486, %482 : vector<16x128xf32>
      %488 = arith.addf %485, %487 : vector<16x128xf32>
      %c45 = arith.constant 45 : index
      %489 = memref.load %arg2[%c45] : memref<98xf32, #tpu.memory_space<smem>>
      %c94 = arith.constant 94 : index
      %490 = memref.load %arg2[%c94] : memref<98xf32, #tpu.memory_space<smem>>
      %c125_i32_140 = arith.constant 125 : i32
      %491 = tpu.dynamic_rotate %459 by %c125_i32_140 dim 1 : vector<16x128xf32>, i32 -> vector<16x128xf32>
      %c125_i32_141 = arith.constant 125 : i32
      %492 = tpu.dynamic_rotate %460 by %c125_i32_141 dim 1 : vector<16x128xf32>, i32 -> vector<16x128xf32>
      %493 = vector.broadcast %489 : f32 to vector<16x128xf32>
      %494 = arith.mulf %493, %491 : vector<16x128xf32>
      %495 = arith.addf %488, %494 : vector<16x128xf32>
      %496 = vector.broadcast %490 : f32 to vector<16x128xf32>
      %497 = arith.mulf %496, %492 : vector<16x128xf32>
      %498 = arith.addf %495, %497 : vector<16x128xf32>
      %c46 = arith.constant 46 : index
      %499 = memref.load %arg2[%c46] : memref<98xf32, #tpu.memory_space<smem>>
      %c95 = arith.constant 95 : index
      %500 = memref.load %arg2[%c95] : memref<98xf32, #tpu.memory_space<smem>>
      %c124_i32_142 = arith.constant 124 : i32
      %501 = tpu.dynamic_rotate %459 by %c124_i32_142 dim 1 : vector<16x128xf32>, i32 -> vector<16x128xf32>
      %c124_i32_143 = arith.constant 124 : i32
      %502 = tpu.dynamic_rotate %460 by %c124_i32_143 dim 1 : vector<16x128xf32>, i32 -> vector<16x128xf32>
      %503 = vector.broadcast %499 : f32 to vector<16x128xf32>
      %504 = arith.mulf %503, %501 : vector<16x128xf32>
      %505 = arith.addf %498, %504 : vector<16x128xf32>
      %506 = vector.broadcast %500 : f32 to vector<16x128xf32>
      %507 = arith.mulf %506, %502 : vector<16x128xf32>
      %508 = arith.addf %505, %507 : vector<16x128xf32>
      %c47 = arith.constant 47 : index
      %509 = memref.load %arg2[%c47] : memref<98xf32, #tpu.memory_space<smem>>
      %c96 = arith.constant 96 : index
      %510 = memref.load %arg2[%c96] : memref<98xf32, #tpu.memory_space<smem>>
      %c123_i32_144 = arith.constant 123 : i32
      %511 = tpu.dynamic_rotate %459 by %c123_i32_144 dim 1 : vector<16x128xf32>, i32 -> vector<16x128xf32>
      %c123_i32_145 = arith.constant 123 : i32
      %512 = tpu.dynamic_rotate %460 by %c123_i32_145 dim 1 : vector<16x128xf32>, i32 -> vector<16x128xf32>
      %513 = vector.broadcast %509 : f32 to vector<16x128xf32>
      %514 = arith.mulf %513, %511 : vector<16x128xf32>
      %515 = arith.addf %508, %514 : vector<16x128xf32>
      %516 = vector.broadcast %510 : f32 to vector<16x128xf32>
      %517 = arith.mulf %516, %512 : vector<16x128xf32>
      %518 = arith.addf %515, %517 : vector<16x128xf32>
      %c48 = arith.constant 48 : index
      %519 = memref.load %arg2[%c48] : memref<98xf32, #tpu.memory_space<smem>>
      %c97 = arith.constant 97 : index
      %520 = memref.load %arg2[%c97] : memref<98xf32, #tpu.memory_space<smem>>
      %c122_i32_146 = arith.constant 122 : i32
      %521 = tpu.dynamic_rotate %459 by %c122_i32_146 dim 1 : vector<16x128xf32>, i32 -> vector<16x128xf32>
      %c122_i32_147 = arith.constant 122 : i32
      %522 = tpu.dynamic_rotate %460 by %c122_i32_147 dim 1 : vector<16x128xf32>, i32 -> vector<16x128xf32>
      %523 = vector.broadcast %519 : f32 to vector<16x128xf32>
      %524 = arith.mulf %523, %521 : vector<16x128xf32>
      %525 = arith.addf %518, %524 : vector<16x128xf32>
      %526 = vector.broadcast %520 : f32 to vector<16x128xf32>
      %527 = arith.mulf %526, %522 : vector<16x128xf32>
      %528 = arith.addf %525, %527 : vector<16x128xf32>
      %529 = arith.negf %528 : vector<16x128xf32>
      %530 = math.exp %529 : vector<16x128xf32>
      %cst_148 = arith.constant 1.000000e+00 : f32
      %531 = vector.broadcast %cst_148 : f32 to vector<16x128xf32>
      %532 = arith.addf %531, %530 : vector<16x128xf32>
      %533 = arith.divf %531, %532 : vector<16x128xf32>
      %c0_149 = arith.constant 0 : index
      %c0_150 = arith.constant 0 : index
      %c0_151 = arith.constant 0 : index
      %534 = vector.load %arg7[%c0_149, %c0_150, %c0_151] : memref<1x16x128xf32, #tpu.memory_space<vmem>>, vector<1x16x128xf32>
      %535 = vector.shape_cast %534 : vector<1x16x128xf32> to vector<16x128xf32>
      %536 = vector.shape_cast %533 : vector<16x128xf32> to vector<1x16x128xf32>
      tpu.vector_store %arg7[%c0_149, %c0_150, %c0_151], %536 {strides = array<i32>} : memref<1x16x128xf32, #tpu.memory_space<vmem>>, vector<1x16x128xf32>,
    } else {
    }
    return
  }
  func.func @transform_0(%arg0: i32, %arg1: i32) -> i32 {
    %c0_i32 = arith.constant 0 : i32
    %c0_i32_0 = arith.constant 0 : i32
    return %c0_i32 : i32
  }
  func.func @transform_1(%arg0: i32, %arg1: i32) -> i32 {
    %c0_i32 = arith.constant 0 : i32
    %c0_i32_0 = arith.constant 0 : i32
    return %c0_i32 : i32
  }
  func.func @transform_2(%arg0: i32, %arg1: i32) -> (i32, i32, i32, i32) {
    %c0_i32 = arith.constant 0 : i32
    %c0_i32_0 = arith.constant 0 : i32
    %c0_i32_1 = arith.constant 0 : i32
    return %arg0, %arg1, %c0_i32, %c0_i32_0 : i32, i32, i32, i32
  }
  func.func @transform_3(%arg0: i32, %arg1: i32) -> (i32, i32, i32, i32) {
    %c0_i32 = arith.constant 0 : i32
    %c0_i32_0 = arith.constant 0 : i32
    %c0_i32_1 = arith.constant 0 : i32
    return %arg0, %arg1, %c0_i32, %c0_i32_0 : i32, i32, i32, i32
  }
  func.func @transform_4(%arg0: i32, %arg1: i32) -> (i32, i32, i32, i32) {
    %c0_i32 = arith.constant 0 : i32
    %c0_i32_0 = arith.constant 0 : i32
    %c0_i32_1 = arith.constant 0 : i32
    return %arg0, %arg1, %c0_i32, %c0_i32_0 : i32, i32, i32, i32
  }
  func.func @transform_5(%arg0: i32, %arg1: i32) -> (i32, i32, i32) {
    %c0_i32 = arith.constant 0 : i32
    %c0_i32_0 = arith.constant 0 : i32
    %c0_i32_1 = arith.constant 0 : i32
    return %arg0, %c0_i32, %c0_i32_0 : i32, i32, i32
  }
}

</mosaic_0001>

<bundles_post_ra>
// kernel: tpu_custom_call.1
= control target key start
LH: loop header
LB: loop body
LE: loop exit
PB: predicated region body
PF: predicated region fallthrough
CT: control target
= control target key end

     0   :  { %s3444_s0 = inlined_call_operand.vmem [shape: f32[98], index: 0, kind: input, shape index: {}]   ;;  %s3445_s1 = inlined_call_operand.<no memory space> [shape: f32[1], index: 1, kind: input, shape index: {}]   ;;  %s3446_s2 = inlined_call_operand.hbm [shape: f32[2,4,16,16], index: 2, kind: input, shape index: {}]   ;;  %s3447_s3 = inlined_call_operand.hbm [shape: f32[2,4,16,16], index: 3, kind: input, shape index: {}]   ;;  %s3448_s4 = inlined_call_operand.hbm [shape: f32[2,4,16,16], index: 4, kind: input, shape index: {}]   ;;  %s3449_s5 = inlined_call_operand.hbm [shape: f32[2,16,128], index: 5, kind: output, shape index: {}]  }
   0x1   :  { %3459 = sst [smem:[#allocation25_spill]] %s3444_s0 }
   0x2   :  { %3460 = sst [smem:[#allocation26_spill]] %s3446_s2 }
   0x3   :  { %3461 = sst [smem:[#allocation27_spill]] %s3447_s3 }
   0x4   :  { %10 = sst [smem:[#allocation8]] %s3445_s1 }
   0x5   :  { %11 = vsyncpa [#allocation12], 0 }
   0x6   :  { %12 = vsyncpa [#allocation10], 0 }
   0x7   :  { %14 = vsyncpa [#allocation10 + $0x1], 0 }
   0x8   :  { %15 = vsyncpa [#allocation15], 0 }
   0x9   :  { %17 = vsyncpa [#allocation15 + $0x1], 0 }
   0xa   :  { %18 = vsyncpa [#allocation11], 0 }
   0xb   :  { %20 = vsyncpa [#allocation11 + $0x1], 0  ;;  %s2159_s20 = smov 0   ;;  %s2161_s21 = smov 0  }
   0xc   :  { %s2163_s22 = smov 0   ;;  %s2165_s23 = smov 0  }
   0xd   :  { %s2167_s24 = smov 0   ;;  %s2169_s25 = smov 0  }
   0xe LB: > { %s38_s1 = sadd.s32 1, %s2103_s24  ;;  %s89_s26 = sadd.s32 1, %s2095_s22  ;;  %s2107_s25 = sphi %s2169_s25, %s26_s25   ;;  %s2103_s24 = sphi %s2167_s24, %s3489_s24   ;;  %s2099_s23 = sphi %s2165_s23, %s3488_s23   ;;  %s2095_s22 = sphi %s2163_s22, %s3487_s22   ;;  %s2091_s21 = sphi %s2161_s21, %s3486_s21   ;;  %s2087_s20 = sphi %s2159_s20, %s3485_s20  }
   0xf   : > { %p40_p0 = scmp.ge.s32.totalorder %s38_s1, 2  ;;  %p96_p1 = scmp.ne.s32.totalorder %s2095_s22, %s2091_s21 }
  0x10   : > { %p97_p2 = scmp.eq.s32.totalorder %s2107_s25, 0  ;;  %p1848_p5 = scmp.lt.s32.totalorder %s2107_s25, 2 }
  0x11   : > { %s3491_s1 = smov (%p40_p0, %s38_s1), 0  ;;  %s3454_s28 = sand.u32 1, %s2095_s22  }
  0x12   : > { %3462 = sst [smem:[#allocation22_spill]] %s3491_s1  ;;  %p98_p4 = por %p97_p2, %p96_p1 }
  0x13   : > { %s84_s27 = ssub.s32 %s2103_s24, %s3491_s1  ;;  %s2206_s29 = sshll.u32 %s3454_s28, 6 }
  0x14   : > { %p87_p6 = scmp.eq.s32.totalorder %s84_s27, 0  ;;  %s2209_s30 = sshll.u32 %s2103_s24, 10 }
  0x15   : > { %p2211_p7 = pnand %p1848_p5, %p98_p4  ;;  %s246_s8 = sand.u32 1, %s2107_s25  }
  0x16   : > { %s2216_s7 = scalar_select %p87_p6, %s2095_s22, %s89_s26  }
  0x17   : > { %s3464_s3 = sld [smem:[#allocation27_spill]]  ;;  %s250_s12 = scalar_lea.vmem [#allocation14], %s2206_s29 }
  0x18   : > { %s260_s13 = sshll.u32 %s250_s12, 4  ;;  %s2224_s14 = scalar_lea.sflag [#allocation15], %s246_s8  ;;  %s261_s13 = int_to_ptr.vmem [resolvable:$true] %s260_s13 }
  0x19   : > { %p3457_p8 = pneg %p2211_p7  ;;  %s1933_s15 = scalar_lea.vmem %s261_s13, 1024 }
  0x1a   : > { %p1934_p9 = scmp.ne.s32.totalorder %s261_s13, %s1933_s15  ;;  %s2109_s16 = smov [#allocation14]  }
  0x1b   : > { %s1938_s17 = sshll.u32 %s2109_s16, 4  ;;  %s1939_s17 = int_to_ptr.vmem [resolvable:$false] %s1938_s17 }
  0x1c   : > { %p1936_p10 = pnand %p1934_p9, %p3457_p8  ;;  %s1940_s18 = scalar_lea.vmem %s1939_s17, 2048 }
  0x1d   : > { %s259_s11 = scalar_lea.hbm %s3464_s3, %s2209_s30  ;;  %p1941_p12 = scmp.lt.s32.totalorder %s261_s13, %s1939_s17 }
  0x1e   : > { %p1937_p11 = pneg %p1936_p10  ;;  %p1942_p13 = scmp.lt.s32.totalorder %s1940_s18, %s1933_s15 }
  0x20   : > { %p1943_p0 = por %p1942_p13, %p1941_p12 }
  0x22   : > { %p1944_p2 = pnand %p1943_p0, %p1937_p11 }
  0x24   : > { %1947 = shalt.err (!%p1944_p2)
}
  0x25   : > { %s3450_s19 = smov 128   ;;  %s3452_s26 = smov 8  }
  0x26   : > { %1839 = dma.hbm_to_vmem [thread:$0]  (!%p2211_p7), %s259_s11, 1024, %s261_s13, %s2224_s14, %s3450_s19, %s3450_s19, %s3452_s26  }
  0x27   : > { %s2238_s27 = sadd.s32 4294967295, %s2107_s25   ;;  %s1690_s8 = sadd.s32 4294967294, %s2107_s25  }
  0x28   : > { %p102_p4 = scmp.ne.s32.totalorder %s2091_s21, %s2087_s20  ;;  %p3456_p5 = scmp.eq.s32.totalorder %s2238_s27, 0 }
  0x29   : > { %p182_p6 = scmp.eq.s32.totalorder %s2238_s27, 1  ;;  %p188_p9 = scmp.eq.s32.totalorder %s1690_s8, 1 }
  0x2a   : > { %p1691_p10 = scmp.ge.s32.totalorder %s2107_s25, 1  ;;  %p2248_p11 = por %p3456_p5, %p102_p4 }
  0x2b   : > { %p2255_p12 = por %p182_p6, %p96_p1  ;;  %p2259_p13 = por %p188_p9, %p102_p4 }
  0x2c   : > { %p195_p0 = scmp.lt.s32.totalorder %s2107_s25, 3  ;;  %s3468_s0 = sld [smem:[#allocation25_spill]] }
  0x2d   : > { %s3467_s11 = scalar_select %p2259_p13, 1, 0 }
  0x2e   : > { %p2267_p2 = pnand %p1691_p10, %p195_p0  ;;  %s3470_s2 = sld [smem:[#allocation26_spill]] }
  0x2f   : > { %s226_s19 = scalar_lea.vmem [#allocation13], %s2206_s29  ;;  %s3472_s12 = sand.u32 1, %s2095_s22  }
  0x30   : > { %p1829_p1 = pneg %p2267_p2  ;;  %s236_s26 = sshll.u32 %s226_s19, 4  ;;  %s237_s26 = int_to_ptr.vmem [resolvable:$true] %s236_s26 }
  0x31   : > { %s223_s13 = scalar_lea.sflag [#allocation10], %s3472_s12  ;;  %s2112_s3 = smov [#allocation13]  }
  0x32   : > { %s208_s15 = sshll.u32 %s3468_s0, 4  ;;  %p2282_p4 = pnand %p1829_p1, %p3456_p5  ;;  %s2271_s15 = int_to_ptr.vmem [resolvable:$true] %s208_s15 }
  0x33   : > { %s1961_s0 = scalar_lea.vmem %s237_s26, 1024  ;;  %s1966_s1 = sshll.u32 %s2112_s3, 4  ;;  %s1967_s1 = int_to_ptr.vmem [resolvable:$false] %s1966_s1 }
  0x34   : > { %s235_s8 = scalar_lea.hbm %s3470_s2, %s2209_s30  ;;  %p1962_p6 = scmp.ne.s32.totalorder %s237_s26, %s1961_s0 }
  0x35   : > { %s1968_s17 = scalar_lea.vmem %s1967_s1, 2048  ;;  %p1969_p0 = scmp.lt.s32.totalorder %s237_s26, %s1967_s1 }
  0x36   : > { %p1964_p9 = pnand %p1962_p6, %p3457_p8  ;;  %p1970_p3 = scmp.lt.s32.totalorder %s1968_s17, %s1961_s0 }
  0x38   : > { %p1965_p10 = pneg %p1964_p9  ;;  %p1971_p13 = por %p1970_p3, %p1969_p0 }
  0x3a   : > { %p1972_p1 = pnand %p1971_p13, %p1965_p10 }
  0x3c   : > { %1975 = shalt.err (!%p1972_p1)
}
  0x3d   : > { %s3473_s19 = smov 8   ;;  %s3474_s18 = smov 128  }
  0x3e   : > { %1836 = dma.hbm_to_vmem [thread:$0]  (!%p2211_p7), %s235_s8, 1024, %s237_s26, %s223_s13, %s3474_s18, %s3474_s18, %s3473_s19  }
  0x3f   : > { %s1976_s12 = scalar_lea.vmem %s2271_s15, 16  ;;  %p1978_p9 = pneg %p2282_p4 }
  0x40   : > { %p1977_p6 = scmp.ne.s32.totalorder %s2271_s15, %s1976_s12  ;;  %p1984_p3 = scmp.lt.s32.totalorder %s2271_s15, %s2271_s15 }
  0x41   : > { %p1985_p13 = scmp.lt.s32.totalorder %s1976_s12, %s1976_s12 }
  0x42   : > { %p1979_p5 = pnand %p1978_p9, %p1977_p6 }
  0x43   : > { %p1986_p10 = por %p1985_p13, %p1984_p3 }
  0x44   : > { %p1980_p8 = pneg %p1979_p5 }
  0x46   : > { %p1987_p0 = pnand %p1986_p10, %p1980_p8 }
  0x48   : > { %1990 = shalt.err (!%p1987_p0)
}
  0x49   : > { %s2113_s0 = smov [#allocation9]   ;;  %s283_s26 = scalar_lea.hbm %s3448_s4, %s2209_s30 }
  0x4a   : > { %1832 = dma.vmem_to_smem (!%p2282_p4), %s2271_s15, 16, %s2113_s0, [#allocation12]  }
  0x4b   : > { %s274_s8 = scalar_lea.vmem [#allocation16], %s2206_s29  ;;  %p3475_p8 = pneg %p2211_p7 }
  0x4c   : > { %s284_s13 = sshll.u32 %s274_s8, 4  ;;  %s2114_s12 = smov [#allocation16]   ;;  %s285_s13 = int_to_ptr.vmem [resolvable:$true] %s284_s13 }
  0x4d   : > { %s2004_s17 = scalar_lea.vmem %s285_s13, 1024  ;;  %s2009_s28 = sshll.u32 %s2114_s12, 4  ;;  %s2010_s28 = int_to_ptr.vmem [resolvable:$false] %s2009_s28 }
  0x4e   : > { %p2005_p5 = scmp.ne.s32.totalorder %s285_s13, %s2004_s17  ;;  %s2011_s2 = scalar_lea.vmem %s2010_s28, 2048 }
  0x4f   : > { %p2012_p9 = scmp.lt.s32.totalorder %s285_s13, %s2010_s28  ;;  %p2013_p3 = scmp.lt.s32.totalorder %s2011_s2, %s2004_s17 }
  0x50   : > { %p2007_p1 = pnand %p2005_p5, %p3475_p8 }
  0x51   : > { %p2014_p4 = por %p2013_p3, %p2012_p9 }
  0x52   : > { %p2008_p6 = pneg %p2007_p1 }
  0x54   : > { %p2015_p13 = pnand %p2014_p4, %p2008_p6 }
  0x56   : > { %2018 = shalt.err (!%p2015_p13)
}
  0x57   : > { %1842 = dma.hbm_to_vmem [thread:$0]  (!%p2211_p7), %s283_s26, 1024, %s285_s13, %s2224_s14, %s3474_s18, %s3474_s18, %s3473_s19  }
  0x58   : > { %296 = sbr.rel (%p2267_p2) target bundleno = 755 (0x2f3), region = 40 }
  0x5d   : > { %p3476_p10 = scmp.eq.s32.totalorder %s2238_s27, 0 }
  0x5f   : > { %2070 = dma.done.wait (%p3476_p10), [#allocation12], 16   ;;  %p3477_p0 = pmov %p3476_p10 }
  0x60   : > { %s2326_s2 = sand.u32 1, %s2091_s21  }
  0x61   : > { %2072 = vsyncadd (%p3477_p0), [#allocation12], 4294967280  ;;  %s1705_s29 = sshll.u32 %s2326_s2, 6  ;;  %s303_s30 = scalar_lea.sflag [#allocation10], %s2326_s2 }
  0x62   : > { %s2330_s6 = scalar_lea.vmem [#allocation13], %s1705_s29 }
  0x63   : > { %2074 = dma.done.wait (%p2248_p11), %s303_s30, 1024  }
  0x64   : > { %2076 = vsyncadd (%p2248_p11), %s303_s30, 4294966272  ;;  %s311_s14 = sand.u32 1, %s2238_s27   ;;  %s2337_s16 = scalar_lea.vmem [#allocation14], %s1705_s29 }
  0x65   : > { %s312_s15 = scalar_lea.sflag [#allocation15], %s311_s14 }
  0x66   : > { %2078 = dma.done.wait (%p2248_p11), %s312_s15, 2048  }
  0x67   : > { %2080 = vsyncadd (%p2248_p11), %s312_s15, 4294965248  ;;  %s2343_s19 = scalar_lea.vmem [#allocation16], %s1705_s29 }
  0x68   : > { %329 = sfence }
  0x69   : > { %v365_v0 = vld [vmem:[%s2330_s6] sm:$0xff]  ;;  %v367_v1 = vld [vmem:[%s2330_s6 + $0x10] sm:$0xff]  ;;  %vm389_vm0 = vcmask 130048   ;;  %v2115_v9 = vmov 0.0   ;;  %v366_v27 = vld [vmem:[%s2330_s6 + $0x8] sm:$0xff]  ;;  %s2116_s27 = smov 3  }
  0x6a   : > { %v2348_v2 = vld [vmem:[%s2330_s6 + $0x20] sm:$0xff]  ;;  %v2351_v3 = vld [vmem:[%s2330_s6 + $0x30] sm:$0xff]  ;;  %v2356_v6 = vsel %vm389_vm0, %v367_v1, 0.0  ;;  %v436_v7 = vsel %vm389_vm0, %v365_v0, -inf  ;;  %v437_v8 = vsel %vm389_vm0, %v367_v1, -inf  ;;  %538 = vst [vmem:[#allocation7] sm:$0xff] %v2115_v9 }
  0x6b   : > { %v373_v4 = vld [vmem:[%s2337_s16] sm:$0xff]  ;;  %v375_v5 = vld [vmem:[%s2337_s16 + $0x10] sm:$0xff]  ;;  %539 = vst [vmem:[#allocation7 + $0x8] sm:$0xff] %v2115_v9  ;;  %535 = vst [vmem:[#allocation6] sm:$0xff] %v2115_v9  ;;  %v438_v15 = vsel %vm389_vm0, %v2348_v2, -inf  ;;  %v440_v21 = vsel %vm389_vm0, %v2351_v3, -inf }
  0x6c   : > { %536 = vst [vmem:[#allocation6 + $0x8] sm:$0xff] %v2115_v9  ;;  %537 = vst [vmem:[#allocation6 + $0x10] sm:$0x3f] %v2115_v9  ;;  %v2361_v10 = vld [vmem:[%s2337_s16 + $0x20] sm:$0xff]  ;;  %v2364_v11 = vld [vmem:[%s2337_s16 + $0x30] sm:$0xff]  ;;  %v2368_v13 = vsel %vm389_vm0, %v373_v4, 0.0  ;;  %v439_v20 = vmax.f32 %v436_v7, %v438_v15  ;;  %v441_v24 = vmax.f32 %v437_v8, %v440_v21 }
  0x6d   : > { %540 = vst [vmem:[#allocation7 + $0x10] sm:$0x3f] %v2115_v9  ;;  %v381_v12 = vld [vmem:[%s2343_s19] sm:$0xff]  ;;  %v2371_v14 = vsel %vm389_vm0, %v375_v5, 0.0  ;;  %v383_v16 = vld [vmem:[%s2343_s19 + $0x10] sm:$0xff]  ;;  %v450_v22 = vsel %vm389_vm0, %v373_v4, -inf }
  0x6e   : > { %v2377_v17 = vld [vmem:[%s2343_s19 + $0x20] sm:$0xff]  ;;  %v2380_v18 = vld [vmem:[%s2343_s19 + $0x30] sm:$0xff]  ;;  %v2383_v19 = vsel %vm389_vm0, %v381_v12, 0.0  ;;  %v2389_v23 = vsel %vm389_vm0, %v383_v16, 0.0  ;;  %v451_v25 = vsel %vm389_vm0, %v375_v5, -inf  ;;  %v452_v26 = vsel %vm389_vm0, %v2361_v10, -inf }
  0x6f   : > { %v453_v28 = vmax.f32 %v450_v22, %v452_v26  ;;  %v454_v29 = vsel %vm389_vm0, %v2364_v11, -inf  ;;  %v464_v30 = vsel %vm389_vm0, %v381_v12, -inf  ;;  %v465_v31 = vsel %vm389_vm0, %v383_v16, -inf  ;;  %v368_v32 = vld [vmem:[%s2330_s6 + $0x18] sm:$0xff]  ;;  %v374_v33 = vld [vmem:[%s2337_s16 + $0x8] sm:$0xff]  ;;  %s2117_s9 = smov 127  }
  0x70   : > { %v376_v34 = vld [vmem:[%s2337_s16 + $0x18] sm:$0xff]  ;;  %v442_v35 = vmax.f32 %v439_v20, %v441_v24  ;;  %v455_v36 = vmax.f32 %v451_v25, %v454_v29  ;;  %v466_v37 = vsel %vm389_vm0, %v2377_v17, -inf  ;;  %v468_v38 = vsel %vm389_vm0, %v2380_v18, -inf  ;;  %v382_v39 = vld [vmem:[%s2343_s19 + $0x8] sm:$0xff]  ;;  %s2118_s18 = smov 126   ;;  %s2119_s0 = smov 125  }
  0x71   : > { %v467_v40 = vmax.f32 %v464_v30, %v466_v37  ;;  %v469_v41 = vmax.f32 %v465_v31, %v468_v38  ;;  %v390_v42 = vsel %vm389_vm0, %v365_v0, 0.0  ;;  %v370_v43 = vld [vmem:[%s2330_s6 + $0x28] sm:$0xff]  ;;  %v372_v44 = vld [vmem:[%s2330_s6 + $0x38] sm:$0xff]  ;;  %v397_v46 = vsel %vm389_vm0, %v366_v27, 0.0  ;;  %s2120_s3 = smov 124   ;;  %s2121_s1 = smov 123  }
  0x72   : > { %v384_v45 = vld [vmem:[%s2343_s19 + $0x18] sm:$0xff]  ;;  %v456_v47 = vmax.f32 %v453_v28, %v455_v36  ;;  %484 = vst.msk [vmem:[#allocation3] sm:$0xff] %vm389_vm0, %v442_v35  ;;  %v378_v48 = vld [vmem:[%s2337_s16 + $0x28] sm:$0xff]  ;;  %v398_v49 = vsel %vm389_vm0, %v368_v32, 0.0  ;;  %v411_v50 = vsel %vm389_vm0, %v374_v33, 0.0  ;;  %v412_v51 = vsel %vm389_vm0, %v376_v34, 0.0 }
  0x73   : > { %v470_v52 = vmax.f32 %v467_v40, %v469_v41  ;;  %v380_v53 = vld [vmem:[%s2337_s16 + $0x38] sm:$0xff]  ;;  %v427_v54 = vsel %vm389_vm0, %v382_v39, 0.0  ;;  %v428_v55 = vsel %vm389_vm0, %v384_v45, 0.0  ;;  %v443_v56 = vsel %vm389_vm0, %v366_v27, -inf  ;;  %v386_v57 = vld [vmem:[%s2343_s19 + $0x28] sm:$0xff]  ;;  %s2122_s26 = smov 122  }
  0x74   : > { %486 = vst.msk [vmem:[#allocation4] sm:$0xff] %vm389_vm0, %v456_v47  ;;  %v388_v58 = vld [vmem:[%s2343_s19 + $0x38] sm:$0xff]  ;;  %v444_v59 = vsel %vm389_vm0, %v368_v32, -inf  ;;  %v445_v60 = vsel %vm389_vm0, %v370_v43, -inf  ;;  %v447_v61 = vsel %vm389_vm0, %v372_v44, -inf  ;;  %v457_v62 = vsel %vm389_vm0, %v374_v33, -inf }
  0x75   : > { %488 = vst.msk [vmem:[#allocation5] sm:$0xff] %vm389_vm0, %v470_v52  ;;  %v446_v63 = vmax.f32 %v443_v56, %v445_v60  ;;  %v448_v0 = vmax.f32 %v444_v59, %v447_v61  ;;  %v458_v1 = vsel %vm389_vm0, %v376_v34, -inf  ;;  %v459_v4 = vsel %vm389_vm0, %v378_v48, -inf  ;;  %s2710_s8 = sld [smem:[#allocation9]] }
  0x76   : > { %v460_v5 = vmax.f32 %v457_v62, %v459_v4  ;;  %v461_v7 = vsel %vm389_vm0, %v380_v53, -inf  ;;  %v471_v8 = vsel %vm389_vm0, %v382_v39, -inf  ;;  %v472_v9 = vsel %vm389_vm0, %v384_v45, -inf  ;;  %s2720_s13 = sld [smem:[#allocation8]] }
  0x77   : > { %v449_v12 = vmax.f32 %v446_v63, %v448_v0  ;;  %v462_v15 = vmax.f32 %v458_v1, %v461_v7  ;;  %v473_v16 = vsel %vm389_vm0, %v386_v57, -inf  ;;  %v475_v20 = vsel %vm389_vm0, %v388_v58, -inf  ;;  %s2726_s17 = sld [smem:[#allocation9 + $0x31]] }
  0x78   : > { %v474_v21 = vmax.f32 %v471_v8, %v473_v16  ;;  %v476_v22 = vmax.f32 %v472_v9, %v475_v20  ;;  %v392_v24 = vadd.f32 %v2356_v6, %v390_v42  ;;  %v393_v25 = vsel %vm389_vm0, %v2348_v2, 0.0  ;;  %s2735_s12 = sld [smem:[#allocation9 + $0x1]] }
  0x79   : > { %v525_v26 = vld [vmem:[#allocation3] sm:$0xff]  ;;  %v463_v27 = vmax.f32 %v460_v5, %v462_v15  ;;  %485 = vst.msk [vmem:[#allocation3 + $0x8] sm:$0xff] %vm389_vm0, %v449_v12  ;;  %v395_v28 = vsel %vm389_vm0, %v2351_v3, 0.0  ;;  %v406_v29 = vadd.f32 %v2371_v14, %v2368_v13  ;;  %v407_v30 = vsel %vm389_vm0, %v2361_v10, 0.0  ;;  %s2739_s28 = sld [smem:[#allocation9 + $0x32]] }
  0x7a   : > { %v477_v31 = vmax.f32 %v474_v21, %v476_v22  ;;  %v394_v32 = vadd.f32 %v393_v25, %v392_v24  ;;  %v409_v6 = vsel %vm389_vm0, %v2364_v11, 0.0  ;;  %v422_v2 = vadd.f32 %v2389_v23, %v2383_v19  ;;  %s2749_s29 = sld [smem:[#allocation9 + $0x2]] }
  0x7b   : > { %v527_v33 = vld [vmem:[#allocation4] sm:$0xff]  ;;  %487 = vst.msk [vmem:[#allocation4 + $0x8] sm:$0xff] %vm389_vm0, %v463_v27  ;;  %v408_v34 = vadd.f32 %v407_v30, %v406_v29  ;;  %v423_v3 = vsel %vm389_vm0, %v2377_v17, 0.0  ;;  %v425_v13 = vsel %vm389_vm0, %v2380_v18, 0.0  ;;  %v399_v14 = vadd.f32 %v398_v49, %v397_v46  ;;  %s2754_s30 = sld [smem:[#allocation9 + $0x33]] }
  0x7c   : > { %v529_v10 = vadd.f32 %v527_v33, %v525_v26  ;;  %v531_v35 = vld [vmem:[#allocation5] sm:$0xff]  ;;  %489 = vst.msk [vmem:[#allocation5 + $0x8] sm:$0xff] %vm389_vm0, %v477_v31  ;;  %v396_v36 = vadd.f32 %v395_v28, %v394_v32  ;;  %v424_v11 = vadd.f32 %v423_v3, %v422_v2  ;;  %v400_v37 = vsel %vm389_vm0, %v370_v43, 0.0  ;;  %s2763_s6 = sld [smem:[#allocation9 + $0x3]] }
  0x7d   : > { %v410_v19 = vadd.f32 %v409_v6, %v408_v34  ;;  %v401_v23 = vadd.f32 %v400_v37, %v399_v14  ;;  %v402_v38 = vsel %vm389_vm0, %v372_v44, 0.0  ;;  %v413_v39 = vadd.f32 %v412_v51, %v411_v50  ;;  %s2770_s14 = sld [smem:[#allocation9 + $0x34]] }
  0x7e   : > { %v533_v40 = vadd.f32 %v531_v35, %v529_v10  ;;  %v426_v41 = vadd.f32 %v425_v13, %v424_v11  ;;  %v414_v17 = vsel %vm389_vm0, %v378_v48, 0.0  ;;  %v416_v18 = vsel %vm389_vm0, %v380_v53, 0.0  ;;  %s2777_s15 = sld [smem:[#allocation9 + $0x4]] }
  0x7f   : > { %v418_v42 = vadd.f32 %v410_v19, %v396_v36  ;;  %v403_v45 = vadd.f32 %v402_v38, %v401_v23  ;;  %v415_v46 = vadd.f32 %v414_v17, %v413_v39  ;;  %v429_v47 = vadd.f32 %v428_v55, %v427_v54  ;;  %s2783_s16 = sld [smem:[#allocation9 + $0x35]] }
  0x80   : > { %554 = vrot.lane.b32.xlu1 %v533_v40, %s2116_s27  ;;  %v526_v49 = vld [vmem:[#allocation3 + $0x8] sm:$0xff]  ;;  %v430_v43 = vsel %vm389_vm0, %v386_v57, 0.0  ;;  %v432_v52 = vsel %vm389_vm0, %v388_v58, 0.0  ;;  %vm549_vm1 = vcmask 154648   ;;  %s2791_s19 = sld [smem:[#allocation9 + $0x5]] }
  0x81   : > { %v434_v56 = vadd.f32 %v426_v41, %v418_v42  ;;  %v417_v44 = vadd.f32 %v416_v18, %v415_v46  ;;  %v431_v50 = vadd.f32 %v430_v43, %v429_v47  ;;  %v570_v43 = vstv %s2710_s8  ;;  %s2805_s8 = sld [smem:[#allocation9 + $0x6]] }
  0x82   : > { %v528_v51 = vld [vmem:[#allocation4 + $0x8] sm:$0xff] }
  0x83   : > { %v530_v59 = vadd.f32 %v528_v51, %v526_v49  ;;  %v532_v60 = vld [vmem:[#allocation5 + $0x8] sm:$0xff]  ;;  %482 = vst.msk [vmem:[#allocation2] sm:$0xff] %vm389_vm0, %v434_v56  ;;  %v419_v48 = vadd.f32 %v417_v44, %v403_v45  ;;  %v433_v53 = vadd.f32 %v432_v52, %v431_v50  ;;  %v563_v50 = vstv %s2720_s13  ;;  %s2809_s13 = sld [smem:[#allocation9 + $0x37]] }
  0x85   : > { %v534_v61 = vadd.f32 %v532_v60, %v530_v59  ;;  %v435_v62 = vadd.f32 %v433_v53, %v419_v48  ;;  %v575_v59 = vstv %s2726_s17  ;;  %v590_v53 = vstv %s2735_s12  ;;  %s2815_s17 = sld [smem:[#allocation9 + $0x7]] }
  0x86   : > { %s2822_s12 = sld [smem:[#allocation9 + $0x38]] }
  0x87   : > { %556 = vrot.lane.b32.xlu1 %v534_v61, %s2116_s27  ;;  %483 = vst.msk [vmem:[#allocation2 + $0x8] sm:$0xff] %vm389_vm0, %v435_v62 }
  0x8a   : > { %v521_v54 = vld [vmem:[#allocation2] sm:$0xff] }
  0x8b   : > { %v523_v55 = vmul.f32 0.25, %v521_v54 }
  0x8d   : > { %543 = vrot.lane.b32.xlu0 %v523_v55, %s2116_s27  ;;  %v595_v55 = vstv %s2739_s28  ;;  %s2833_s28 = sld [smem:[#allocation9 + $0x8]] }
  0x8e   : > { %v522_v57 = vld [vmem:[#allocation2 + $0x8] sm:$0xff] }
  0x8f   : > { %v524_v58 = vmul.f32 0.25, %v522_v57 }
  0x91   : > { %545 = vrot.lane.b32.xlu0 %v524_v58, %s2116_s27  ;;  %s2795_s27 = sld [smem:[#allocation9 + $0x36]] }
  0xf2   : > { %v555_v63 = vpop.permute.xlu1 %554 }
  0xf3   : > { %560 = vst.msk [vmem:[#allocation7 + $0x3] sm:$0xff] %vm549_vm1, %v555_v63 }
  0xf9   : > { %v557_v0 = vpop.permute.xlu1 %556 }
  0xfa   : > { %v2465_v1 = vld [vmem:[#allocation7] sm:$0xff]  ;;  %561 = vst.msk [vmem:[#allocation7 + $0xb] sm:$0xff] %vm549_vm1, %v557_v0  ;;  %v610_v0 = vstv %s2749_s29  ;;  %s2837_s29 = sld [smem:[#allocation9 + $0x39]] }
  0xfb   : > { %586 = vrot.lane.b32.xlu0 %v2465_v1, %s2117_s9  ;;  %v2492_v8 = vld [vmem:[#allocation7 + $0x1] sm:$0xff]  ;;  %v576_v61 = vmul.f32 %v575_v59, %v2465_v1 }
  0xfc   : > { %v2520_v12 = vld [vmem:[#allocation7 + $0x2] sm:$0xff] }
  0xfd   : > { %v2670_v11 = vld [vmem:[#allocation7 + $0x3] sm:$0xff] }
  0xfe   : > { %3478 = vst [vmem:[#allocation23_spill] sm:$0xff] %v2670_v11 }
  0xff   : > { %v544_v4 = vpop.permute.xlu0 %543  ;;  %606 = vrot.lane.b32.xlu0 %v2465_v1, %s2118_s18 }
 0x100   : > { %550 = vst.msk [vmem:[#allocation6 + $0x3] sm:$0xff] %vm549_vm1, %v544_v4 }
 0x101   : > { %v2473_v5 = vld [vmem:[#allocation7 + $0x8] sm:$0xff] }
 0x102   : > { %588 = vrot.lane.b32.xlu1 %v2473_v5, %s2117_s9  ;;  %v2502_v9 = vld [vmem:[#allocation7 + $0x9] sm:$0xff] }
 0x103   : > { %v546_v7 = vpop.permute.xlu0 %545  ;;  %626 = vrot.lane.b32.xlu0 %v2465_v1, %s2119_s0  ;;  %v2530_v15 = vld [vmem:[#allocation7 + $0xa] sm:$0xff] }
 0x104   : > { %551 = vst.msk [vmem:[#allocation6 + $0xb] sm:$0xff] %vm549_vm1, %v546_v7  ;;  %v2688_v39 = vld [vmem:[#allocation7 + $0xb] sm:$0xff] }
 0x106   : > { %608 = vrot.lane.b32.xlu1 %v2473_v5, %s2118_s18 }
 0x107   : > { %646 = vrot.lane.b32.xlu0 %v2465_v1, %s2120_s3  ;;  %v2544_v16 = vld [vmem:[#allocation6] sm:$0xff] }
 0x108   : > { %v2572_v21 = vld [vmem:[#allocation6 + $0x1] sm:$0xff]  ;;  %v571_v44 = vmul.f32 %v570_v43, %v2544_v16 }
 0x109   : > { %v2602_v25 = vld [vmem:[#allocation6 + $0x2] sm:$0xff] }
 0x10a   : > { %628 = vrot.lane.b32.xlu1 %v2473_v5, %s2119_s0  ;;  %v2660_v10 = vld [vmem:[#allocation6 + $0x3] sm:$0xff]  ;;  %v573_v48 = vadd.f32 %v571_v44, %v563_v50 }
 0x10b   : > { %666 = vrot.lane.b32.xlu0 %v2465_v1, %s2121_s1  ;;  %v2554_v20 = vld [vmem:[#allocation6 + $0x8] sm:$0xff] }
 0x10c   : > { %v2582_v22 = vld [vmem:[#allocation6 + $0x9] sm:$0xff]  ;;  %v572_v54 = vmul.f32 %v570_v43, %v2554_v20  ;;  %v578_v58 = vadd.f32 %v576_v61, %v573_v48  ;;  %v577_v61 = vmul.f32 %v575_v59, %v2473_v5 }
 0x10d   : > { %v2616_v28 = vld [vmem:[#allocation6 + $0xa] sm:$0xff] }
 0x10e   : > { %648 = vrot.lane.b32.xlu1 %v2473_v5, %s2120_s3  ;;  %v2678_v19 = vld [vmem:[#allocation6 + $0xb] sm:$0xff] }
 0x10f   : > { %686 = vrot.lane.b32.xlu0 %v2465_v1, %s2122_s26  ;;  %v2799_v59 = vld [vmem:[#allocation6 + $0x4] sm:$0xff] }
 0x112   : > { %668 = vrot.lane.b32.xlu1 %v2473_v5, %s2121_s1 }
 0x113   : > { %722 = vrot.lane.b32.xlu0 %v2492_v8, %s2117_s9 }
 0x116   : > { %688 = vrot.lane.b32.xlu1 %v2473_v5, %s2122_s26 }
 0x117   : > { %742 = vrot.lane.b32.xlu0 %v2492_v8, %s2118_s18 }
 0x11a   : > { %724 = vrot.lane.b32.xlu1 %v2502_v9, %s2117_s9 }
 0x11b   : > { %762 = vrot.lane.b32.xlu0 %v2492_v8, %s2119_s0 }
 0x11e   : > { %744 = vrot.lane.b32.xlu1 %v2502_v9, %s2118_s18 }
 0x11f   : > { %782 = vrot.lane.b32.xlu0 %v2492_v8, %s2120_s3 }
 0x122   : > { %764 = vrot.lane.b32.xlu1 %v2502_v9, %s2119_s0 }
 0x123   : > { %802 = vrot.lane.b32.xlu0 %v2492_v8, %s2121_s1 }
 0x126   : > { %784 = vrot.lane.b32.xlu1 %v2502_v9, %s2120_s3 }
 0x127   : > { %822 = vrot.lane.b32.xlu0 %v2492_v8, %s2122_s26 }
 0x12a   : > { %804 = vrot.lane.b32.xlu1 %v2502_v9, %s2121_s1 }
 0x12b   : > { %858 = vrot.lane.b32.xlu0 %v2520_v12, %s2117_s9 }
 0x12e   : > { %824 = vrot.lane.b32.xlu1 %v2502_v9, %s2122_s26 }
 0x12f   : > { %878 = vrot.lane.b32.xlu0 %v2520_v12, %s2118_s18 }
 0x132   : > { %860 = vrot.lane.b32.xlu1 %v2530_v15, %s2117_s9 }
 0x133   : > { %898 = vrot.lane.b32.xlu0 %v2520_v12, %s2119_s0 }
 0x136   : > { %880 = vrot.lane.b32.xlu1 %v2530_v15, %s2118_s18 }
 0x137   : > { %918 = vrot.lane.b32.xlu0 %v2520_v12, %s2120_s3 }
 0x13a   : > { %900 = vrot.lane.b32.xlu1 %v2530_v15, %s2119_s0 }
 0x13b   : > { %938 = vrot.lane.b32.xlu0 %v2520_v12, %s2121_s1 }
 0x13e   : > { %920 = vrot.lane.b32.xlu1 %v2530_v15, %s2120_s3 }
 0x13f   : > { %582 = vrot.lane.b32.xlu0 %v2544_v16, %s2117_s9 }
 0x142   : > { %940 = vrot.lane.b32.xlu1 %v2530_v15, %s2121_s1 }
 0x143   : > { %602 = vrot.lane.b32.xlu0 %v2544_v16, %s2118_s18 }
 0x146   : > { %584 = vrot.lane.b32.xlu1 %v2554_v20, %s2117_s9 }
 0x147   : > { %622 = vrot.lane.b32.xlu0 %v2544_v16, %s2119_s0 }
 0x14a   : > { %604 = vrot.lane.b32.xlu1 %v2554_v20, %s2118_s18 }
 0x14b   : > { %642 = vrot.lane.b32.xlu0 %v2544_v16, %s2120_s3 }
 0x14e   : > { %624 = vrot.lane.b32.xlu1 %v2554_v20, %s2119_s0 }
 0x14f   : > { %662 = vrot.lane.b32.xlu0 %v2544_v16, %s2121_s1 }
 0x152   : > { %644 = vrot.lane.b32.xlu1 %v2554_v20, %s2120_s3 }
 0x153   : > { %682 = vrot.lane.b32.xlu0 %v2544_v16, %s2122_s26  ;;  %v574_v16 = vadd.f32 %v572_v54, %v563_v50 }
 0x156   : > { %664 = vrot.lane.b32.xlu1 %v2554_v20, %s2121_s1 }
 0x157   : > { %718 = vrot.lane.b32.xlu0 %v2572_v21, %s2117_s9 }
 0x15a   : > { %684 = vrot.lane.b32.xlu1 %v2554_v20, %s2122_s26  ;;  %v615_v20 = vstv %s2754_s30  ;;  %s2847_s30 = sld [smem:[#allocation9 + $0x9]] }
 0x15b   : > { %738 = vrot.lane.b32.xlu0 %v2572_v21, %s2118_s18 }
 0x15e   : > { %720 = vrot.lane.b32.xlu1 %v2582_v22, %s2117_s9 }
 0x15f   : > { %758 = vrot.lane.b32.xlu0 %v2572_v21, %s2119_s0 }
 0x162   : > { %740 = vrot.lane.b32.xlu1 %v2582_v22, %s2118_s18 }
 0x163   : > { %778 = vrot.lane.b32.xlu0 %v2572_v21, %s2120_s3 }
 0x166   : > { %760 = vrot.lane.b32.xlu1 %v2582_v22, %s2119_s0 }
 0x167   : > { %798 = vrot.lane.b32.xlu0 %v2572_v21, %s2121_s1 }
 0x16a   : > { %780 = vrot.lane.b32.xlu1 %v2582_v22, %s2120_s3 }
 0x16b   : > { %818 = vrot.lane.b32.xlu0 %v2572_v21, %s2122_s26 }
 0x16d   : > { %v2600_v24 = vpop.permute.xlu0 %586 }
 0x16e   : > { %800 = vrot.lane.b32.xlu1 %v2582_v22, %s2121_s1  ;;  %v596_v1 = vmul.f32 %v595_v55, %v2600_v24  ;;  %v630_v24 = vstv %s2763_s6  ;;  %s2851_s6 = sld [smem:[#allocation9 + $0x3a]] }
 0x16f   : > { %854 = vrot.lane.b32.xlu0 %v2602_v25, %s2117_s9 }
 0x171   : > { %v2608_v26 = vpop.permute.xlu0 %606 }
 0x172   : > { %820 = vrot.lane.b32.xlu1 %v2582_v22, %s2122_s26  ;;  %v616_v50 = vmul.f32 %v615_v20, %v2608_v26  ;;  %v650_v26 = vstv %s2777_s15  ;;  %s2864_s15 = sld [smem:[#allocation9 + $0x3b]] }
 0x173   : > { %874 = vrot.lane.b32.xlu0 %v2602_v25, %s2118_s18 }
 0x174   : > { %v2614_v27 = vpop.permute.xlu1 %588 }
 0x175   : > { %v2618_v29 = vpop.permute.xlu0 %626 }
 0x176   : > { %856 = vrot.lane.b32.xlu1 %v2616_v28, %s2117_s9 }
 0x177   : > { %894 = vrot.lane.b32.xlu0 %v2602_v25, %s2119_s0 }
 0x178   : > { %v2624_v30 = vpop.permute.xlu1 %608 }
 0x179   : > { %v2626_v31 = vpop.permute.xlu0 %646 }
 0x17a   : > { %876 = vrot.lane.b32.xlu1 %v2616_v28, %s2118_s18 }
 0x17b   : > { %914 = vrot.lane.b32.xlu0 %v2602_v25, %s2120_s3 }
 0x17c   : > { %v2632_v32 = vpop.permute.xlu1 %628 }
 0x17d   : > { %v2634_v6 = vpop.permute.xlu0 %666 }
 0x17e   : > { %896 = vrot.lane.b32.xlu1 %v2616_v28, %s2119_s0 }
 0x17f   : > { %934 = vrot.lane.b32.xlu0 %v2602_v25, %s2121_s1 }
 0x180   : > { %v2640_v2 = vpop.permute.xlu1 %648 }
 0x181   : > { %v2642_v33 = vpop.permute.xlu0 %686 }
 0x182   : > { %916 = vrot.lane.b32.xlu1 %v2616_v28, %s2120_s3 }
 0x183   : > { %954 = vrot.lane.b32.xlu0 %v2602_v25, %s2122_s26 }
 0x184   : > { %v2648_v34 = vpop.permute.xlu1 %668 }
 0x185   : > { %v2650_v3 = vpop.permute.xlu0 %722 }
 0x186   : > { %936 = vrot.lane.b32.xlu1 %v2616_v28, %s2121_s1 }
 0x187   : > { %958 = vrot.lane.b32.xlu0 %v2520_v12, %s2122_s26 }
 0x188   : > { %v2656_v13 = vpop.permute.xlu1 %688 }
 0x189   : > { %v2658_v14 = vpop.permute.xlu0 %742 }
 0x18a   : > { %956 = vrot.lane.b32.xlu1 %v2616_v28, %s2122_s26 }
 0x18b   : > { %990 = vrot.lane.b32.xlu0 %v2660_v10, %s2117_s9 }
 0x18c   : > { %v2666_v35 = vpop.permute.xlu1 %724 }
 0x18d   : > { %v2668_v36 = vpop.permute.xlu0 %762 }
 0x18e   : > { %960 = vrot.lane.b32.xlu1 %v2530_v15, %s2122_s26 }
 0x18f   : > { %994 = vrot.lane.b32.xlu0 %v2670_v11, %s2117_s9 }
 0x190   : > { %v2676_v37 = vpop.permute.xlu1 %744 }
 0x191   : > { %v2680_v23 = vpop.permute.xlu0 %782 }
 0x192   : > { %992 = vrot.lane.b32.xlu1 %v2678_v19, %s2117_s9 }
 0x193   : > { %1010 = vrot.lane.b32.xlu0 %v2660_v10, %s2118_s18 }
 0x194   : > { %v2686_v38 = vpop.permute.xlu1 %764 }
 0x195   : > { %v2690_v40 = vpop.permute.xlu0 %802 }
 0x196   : > { %996 = vrot.lane.b32.xlu1 %v2688_v39, %s2117_s9 }
 0x197   : > { %1014 = vrot.lane.b32.xlu0 %v2670_v11, %s2118_s18 }
 0x198   : > { %v2696_v41 = vpop.permute.xlu1 %784 }
 0x199   : > { %v2698_v17 = vpop.permute.xlu0 %822 }
 0x19a   : > { %1012 = vrot.lane.b32.xlu1 %v2678_v19, %s2118_s18 }
 0x19b   : > { %1030 = vrot.lane.b32.xlu0 %v2660_v10, %s2119_s0 }
 0x19c   : > { %v2704_v18 = vpop.permute.xlu1 %804 }
 0x19d   : > { %v2706_v42 = vpop.permute.xlu0 %858 }
 0x19e   : > { %1016 = vrot.lane.b32.xlu1 %v2688_v39, %s2118_s18 }
 0x19f   : > { %1034 = vrot.lane.b32.xlu0 %v2670_v11, %s2119_s0 }
 0x1a0   : > { %v2714_v45 = vpop.permute.xlu1 %824 }
 0x1a1   : > { %v2716_v46 = vpop.permute.xlu0 %878 }
 0x1a2   : > { %1032 = vrot.lane.b32.xlu1 %v2678_v19, %s2119_s0 }
 0x1a3   : > { %1050 = vrot.lane.b32.xlu0 %v2660_v10, %s2120_s3 }
 0x1a4   : > { %v2724_v47 = vpop.permute.xlu1 %860 }
 0x1a5   : > { %v2728_v49 = vpop.permute.xlu0 %898 }
 0x1a6   : > { %1036 = vrot.lane.b32.xlu1 %v2688_v39, %s2119_s0 }
 0x1a7   : > { %1054 = vrot.lane.b32.xlu0 %v2670_v11, %s2120_s3 }
 0x1a8   : > { %v2737_v52 = vpop.permute.xlu1 %880 }
 0x1a9   : > { %v2741_v56 = vpop.permute.xlu0 %918 }
 0x1aa   : > { %1052 = vrot.lane.b32.xlu1 %v2678_v19, %s2120_s3 }
 0x1ab   : > { %1070 = vrot.lane.b32.xlu0 %v2660_v10, %s2121_s1 }
 0x1ac   : > { %v2751_v51 = vpop.permute.xlu1 %900 }
 0x1ad   : > { %v2756_v60 = vpop.permute.xlu0 %938 }
 0x1ae   : > { %1056 = vrot.lane.b32.xlu1 %v2688_v39, %s2120_s3 }
 0x1af   : > { %1074 = vrot.lane.b32.xlu0 %v2670_v11, %s2121_s1 }
 0x1b0   : > { %v2766_v62 = vpop.permute.xlu1 %920 }
 0x1b1   : > { %v583_v57 = vpop.permute.xlu0 %582 }
 0x1b2   : > { %1072 = vrot.lane.b32.xlu1 %v2678_v19, %s2121_s1  ;;  %v591_v63 = vmul.f32 %v590_v53, %v583_v57 }
 0x1b3   : > { %1090 = vrot.lane.b32.xlu0 %v2660_v10, %s2122_s26 }
 0x1b4   : > { %v2780_v4 = vpop.permute.xlu1 %940  ;;  %v593_v7 = vadd.f32 %v591_v63, %v578_v58  ;;  %v579_v58 = vadd.f32 %v577_v61, %v574_v16  ;;  %v635_v63 = vstv %s2770_s14  ;;  %s2860_s14 = sld [smem:[#allocation9 + $0xa]] }
 0x1b5   : > { %3479 = vst [vmem:[#allocation24_spill] sm:$0xff] %v2780_v4  ;;  %v603_v43 = vpop.permute.xlu0 %602  ;;  %v636_v16 = vmul.f32 %v635_v63, %v2618_v29  ;;  %v617_v29 = vmul.f32 %v615_v20, %v2624_v30 }
 0x1b6   : > { %v598_v44 = vadd.f32 %v596_v1, %v593_v7  ;;  %1076 = vrot.lane.b32.xlu1 %v2688_v39, %s2121_s1  ;;  %v611_v48 = vmul.f32 %v610_v0, %v603_v43 }
 0x1b7   : > { %1094 = vrot.lane.b32.xlu0 %v2670_v11, %s2122_s26  ;;  %v597_v11 = vmul.f32 %v595_v55, %v2614_v27 }
 0x1b8   : > { %v585_v54 = vpop.permute.xlu1 %584  ;;  %v613_v57 = vadd.f32 %v611_v48, %v598_v44  ;;  %v655_v48 = vstv %s2783_s16  ;;  %s2872_s16 = sld [smem:[#allocation9 + $0xb]] }
 0x1b9   : > { %v592_v1 = vmul.f32 %v590_v53, %v585_v54  ;;  %v623_v7 = vpop.permute.xlu0 %622 }
 0x1ba   : > { %v618_v43 = vadd.f32 %v616_v50, %v613_v57  ;;  %1092 = vrot.lane.b32.xlu1 %v2678_v19, %s2122_s26  ;;  %v631_v5 = vmul.f32 %v630_v24, %v623_v7  ;;  %v2813_v57 = vld [vmem:[#allocation7 + $0x4] sm:$0xff]  ;;  %v675_v7 = vstv %s2795_s27  ;;  %s2885_s27 = sld [smem:[#allocation9 + $0xc]] }
 0x1bb   : > { %v594_v4 = vadd.f32 %v592_v1, %v579_v58  ;;  %1126 = vrot.lane.b32.xlu0 %v2799_v59, %s2117_s9  ;;  %v670_v1 = vstv %s2791_s19  ;;  %s2877_s19 = sld [smem:[#allocation9 + $0x3c]] }
 0x1bc   : > { %v605_v53 = vpop.permute.xlu1 %604  ;;  %v633_v44 = vadd.f32 %v631_v5, %v618_v43 }
 0x1bd   : > { %v599_v61 = vadd.f32 %v597_v11, %v594_v4  ;;  %v612_v50 = vmul.f32 %v610_v0, %v605_v53  ;;  %v643_v54 = vpop.permute.xlu0 %642  ;;  %v656_v11 = vmul.f32 %v655_v48, %v2626_v31  ;;  %v690_v31 = vstv %s2805_s8  ;;  %s2889_s8 = sld [smem:[#allocation9 + $0x3d]] }
 0x1be   : > { %v638_v27 = vadd.f32 %v636_v16, %v633_v44  ;;  %1096 = vrot.lane.b32.xlu1 %v2688_v39, %s2122_s26  ;;  %v651_v55 = vmul.f32 %v650_v26, %v643_v54  ;;  %v2825_v16 = vld [vmem:[#allocation6 + $0xc] sm:$0xff]  ;;  %v637_v44 = vmul.f32 %v635_v63, %v2632_v32 }
 0x1bf   : > { %v614_v58 = vadd.f32 %v612_v50, %v599_v61  ;;  %1130 = vrot.lane.b32.xlu0 %v2813_v57, %s2117_s9 }
 0x1c0   : > { %v625_v0 = vpop.permute.xlu1 %624  ;;  %v653_v4 = vadd.f32 %v651_v55, %v638_v27  ;;  %v695_v27 = vstv %s2809_s13  ;;  %s2897_s13 = sld [smem:[#allocation9 + $0xd]] }
 0x1c1   : > { %v619_v43 = vadd.f32 %v617_v29, %v614_v58  ;;  %v632_v5 = vmul.f32 %v630_v24, %v625_v0  ;;  %v663_v53 = vpop.permute.xlu0 %662  ;;  %v676_v24 = vmul.f32 %v675_v7, %v2634_v6  ;;  %v2839_v58 = vld [vmem:[#allocation7 + $0xc] sm:$0xff]  ;;  %v706_v0 = vstv %s2815_s17  ;;  %s2901_s17 = sld [smem:[#allocation9 + $0x3e]] }
 0x1c2   : > { %v658_v30 = vadd.f32 %v656_v11, %v653_v4  ;;  %1128 = vrot.lane.b32.xlu1 %v2825_v16, %s2117_s9  ;;  %v671_v20 = vmul.f32 %v670_v1, %v663_v53  ;;  %v657_v4 = vmul.f32 %v655_v48, %v2640_v2  ;;  %v711_v53 = vstv %s2822_s12  ;;  %s2905_s12 = sld [smem:[#allocation9 + $0xe]] }
 0x1c3   : > { %v634_v61 = vadd.f32 %v632_v5, %v619_v43  ;;  %1146 = vrot.lane.b32.xlu0 %v2799_v59, %s2118_s18  ;;  %v707_v2 = vmul.f32 %v706_v0, %v2572_v21 }
 0x1c4   : > { %v645_v50 = vpop.permute.xlu1 %644  ;;  %v673_v54 = vadd.f32 %v671_v20, %v658_v30 }
 0x1c5   : > { %v639_v55 = vadd.f32 %v637_v44, %v634_v61  ;;  %v652_v29 = vmul.f32 %v650_v26, %v645_v50  ;;  %v683_v32 = vpop.permute.xlu0 %682  ;;  %v696_v26 = vmul.f32 %v695_v27, %v2642_v33  ;;  %v677_v61 = vmul.f32 %v675_v7, %v2648_v34 }
 0x1c6   : > { %v678_v63 = vadd.f32 %v676_v24, %v673_v54  ;;  %1132 = vrot.lane.b32.xlu1 %v2839_v58, %s2117_s9  ;;  %v691_v11 = vmul.f32 %v690_v31, %v683_v32  ;;  %v726_v50 = vstv %s2833_s28  ;;  %v712_v33 = vmul.f32 %v711_v53, %v2492_v8  ;;  %s2912_s28 = sld [smem:[#allocation9 + $0x3f]] }
 0x1c7   : > { %v654_v6 = vadd.f32 %v652_v29, %v639_v55  ;;  %1150 = vrot.lane.b32.xlu0 %v2813_v57, %s2118_s18  ;;  %v731_v55 = vstv %s2837_s29  ;;  %s2921_s29 = sld [smem:[#allocation9 + $0xf]] }
 0x1c8   : > { %v665_v43 = vpop.permute.xlu1 %664  ;;  %v693_v5 = vadd.f32 %v691_v11, %v678_v63  ;;  %v697_v63 = vmul.f32 %v695_v27, %v2656_v13  ;;  %v732_v8 = vmul.f32 %v731_v55, %v2650_v3 }
 0x1c9   : > { %v659_v30 = vadd.f32 %v657_v4, %v654_v6  ;;  %v672_v20 = vmul.f32 %v670_v1, %v665_v43  ;;  %v719_v44 = vpop.permute.xlu0 %718  ;;  %v746_v4 = vstv %s2847_s30  ;;  %v751_v43 = vstv %s2851_s6  ;;  %s2925_s30 = sld [smem:[#allocation9 + $0x40]] }
 0x1ca   : > { %v698_v48 = vadd.f32 %v696_v26, %v693_v5  ;;  %1148 = vrot.lane.b32.xlu1 %v2825_v16, %s2118_s18  ;;  %v727_v7 = vmul.f32 %v726_v50, %v719_v44  ;;  %v708_v26 = vmul.f32 %v706_v0, %v2582_v22  ;;  %v752_v22 = vmul.f32 %v751_v43, %v2658_v14  ;;  %s2933_s6 = sld [smem:[#allocation9 + $0x10]] }
 0x1cb   : > { %v674_v24 = vadd.f32 %v672_v20, %v659_v30  ;;  %1166 = vrot.lane.b32.xlu0 %v2799_v59, %s2119_s0  ;;  %v713_v20 = vmul.f32 %v711_v53, %v2502_v9 }
 0x1cc   : > { %v709_v1 = vadd.f32 %v707_v2, %v698_v48  ;;  %v685_v54 = vpop.permute.xlu1 %684  ;;  %v766_v2 = vstv %s2860_s14  ;;  %v771_v48 = vstv %s2864_s15  ;;  %s2937_s14 = sld [smem:[#allocation9 + $0x41]] }
 0x1cd   : > { %v679_v21 = vadd.f32 %v677_v61, %v674_v24  ;;  %v692_v29 = vmul.f32 %v690_v31, %v685_v54  ;;  %v739_v32 = vpop.permute.xlu0 %738  ;;  %v772_v14 = vmul.f32 %v771_v48, %v2668_v36  ;;  %v806_v36 = vstv %s2885_s27  ;;  %s2946_s15 = sld [smem:[#allocation9 + $0x11]] }
 0x1ce   : > { %v714_v34 = vadd.f32 %v712_v33, %v709_v1  ;;  %1152 = vrot.lane.b32.xlu1 %v2839_v58, %s2118_s18  ;;  %v747_v30 = vmul.f32 %v746_v4, %v739_v32  ;;  %v733_v1 = vmul.f32 %v731_v55, %v2666_v35  ;;  %v791_v32 = vstv %s2877_s19  ;;  %s2960_s19 = sld [smem:[#allocation9 + $0x12]] }
 0x1cf   : > { %v694_v11 = vadd.f32 %v692_v29, %v679_v21  ;;  %1170 = vrot.lane.b32.xlu0 %v2813_v57, %s2119_s0  ;;  %v786_v21 = vstv %s2872_s16  ;;  %s2950_s16 = sld [smem:[#allocation9 + $0x42]] }
 0x1d0   : > { %v729_v6 = vadd.f32 %v727_v7, %v714_v34  ;;  %v721_v31 = vpop.permute.xlu1 %720  ;;  %s2965_s27 = sld [smem:[#allocation9 + $0x43]] }
 0x1d1   : > { %v699_v5 = vadd.f32 %v697_v63, %v694_v11  ;;  %v759_v13 = vpop.permute.xlu0 %758  ;;  %v728_v24 = vmul.f32 %v726_v50, %v721_v31  ;;  %v753_v11 = vmul.f32 %v751_v43, %v2676_v37  ;;  %v773_v37 = vmul.f32 %v771_v48, %v2686_v38 }
 0x1d2   : > { %v734_v27 = vadd.f32 %v732_v8, %v729_v6  ;;  %1168 = vrot.lane.b32.xlu1 %v2825_v16, %s2119_s0  ;;  %v767_v53 = vmul.f32 %v766_v2, %v759_v13  ;;  %v792_v6 = vmul.f32 %v791_v32, %v2680_v23 }
 0x1d3   : > { %v710_v44 = vadd.f32 %v708_v26, %v699_v5  ;;  %1186 = vrot.lane.b32.xlu0 %v2799_v59, %s2120_s3  ;;  %v811_v26 = vstv %s2889_s8  ;;  %s2975_s8 = sld [smem:[#allocation9 + $0x13]] }
 0x1d4   : > { %v749_v3 = vadd.f32 %v747_v30, %v734_v27  ;;  %v741_v0 = vpop.permute.xlu1 %740  ;;  %v812_v23 = vmul.f32 %v811_v26, %v2690_v40 }
 0x1d5   : > { %v715_v61 = vadd.f32 %v713_v20, %v710_v44  ;;  %v779_v33 = vpop.permute.xlu0 %778  ;;  %v748_v7 = vmul.f32 %v746_v4, %v741_v0  ;;  %v826_v44 = vstv %s2897_s13  ;;  %s2979_s13 = sld [smem:[#allocation9 + $0x44]] }
 0x1d6   : > { %v754_v9 = vadd.f32 %v752_v22, %v749_v3  ;;  %1172 = vrot.lane.b32.xlu1 %v2839_v58, %s2119_s0  ;;  %v787_v55 = vmul.f32 %v786_v21, %v779_v33  ;;  %v831_v3 = vstv %s2901_s17  ;;  %v842_v33 = vstv %s2905_s12  ;;  %s2989_s17 = sld [smem:[#allocation9 + $0x14]] }
 0x1d7   : > { %v730_v54 = vadd.f32 %v728_v24, %v715_v61  ;;  %1190 = vrot.lane.b32.xlu0 %v2813_v57, %s2120_s3  ;;  %v832_v40 = vmul.f32 %v831_v3, %v2698_v17  ;;  %s2995_s12 = sld [smem:[#allocation9 + $0x45]] }
 0x1d8   : > { %v769_v29 = vadd.f32 %v767_v53, %v754_v9  ;;  %v761_v50 = vpop.permute.xlu1 %760  ;;  %v793_v9 = vmul.f32 %v791_v32, %v2696_v41  ;;  %v843_v41 = vmul.f32 %v842_v33, %v2602_v25 }
 0x1d9   : > { %v735_v34 = vadd.f32 %v733_v1, %v730_v54  ;;  %v799_v63 = vpop.permute.xlu0 %798  ;;  %v768_v13 = vmul.f32 %v766_v2, %v761_v50 }
 0x1da   : > { %v774_v35 = vadd.f32 %v772_v14, %v769_v29  ;;  %1188 = vrot.lane.b32.xlu1 %v2825_v16, %s2120_s3  ;;  %v807_v20 = vmul.f32 %v806_v36, %v799_v63  ;;  %v862_v63 = vstv %s2921_s29  ;;  %s3006_s29 = sld [smem:[#allocation9 + $0x46]] }
 0x1db   : > { %v750_v8 = vadd.f32 %v748_v7, %v735_v34  ;;  %1206 = vrot.lane.b32.xlu0 %v2799_v59, %s2121_s1  ;;  %v813_v34 = vmul.f32 %v811_v26, %v2704_v18 }
 0x1dc   : > { %v789_v31 = vadd.f32 %v787_v55, %v774_v35  ;;  %v781_v4 = vpop.permute.xlu1 %780 }
 0x1dd   : > { %v755_v5 = vadd.f32 %v753_v11, %v750_v8  ;;  %v819_v27 = vpop.permute.xlu0 %818  ;;  %v788_v61 = vmul.f32 %v786_v21, %v781_v4  ;;  %v847_v21 = vstv %s2912_s28  ;;  %v867_v11 = vstv %s2925_s30  ;;  %s2999_s28 = sld [smem:[#allocation9 + $0x15]] }
 0x1de   : > { %v794_v30 = vadd.f32 %v792_v6, %v789_v31  ;;  %1192 = vrot.lane.b32.xlu1 %v2839_v58, %s2120_s3  ;;  %v827_v48 = vmul.f32 %v826_v44, %v819_v27  ;;  %v848_v17 = vmul.f32 %v847_v21, %v2520_v12  ;;  %v2954_v31 = vld [vmem:[#allocation6 + $0x5] sm:$0xff]  ;;  %v833_v4 = vmul.f32 %v831_v3, %v2714_v45  ;;  %s3015_s30 = sld [smem:[#allocation9 + $0x16]] }
 0x1df   : > { %v770_v43 = vadd.f32 %v768_v13, %v755_v5  ;;  %1210 = vrot.lane.b32.xlu0 %v2813_v57, %s2121_s1  ;;  %v882_v12 = vstv %s2933_s6  ;;  %v868_v5 = vmul.f32 %v867_v11, %v2706_v42  ;;  %s3019_s6 = sld [smem:[#allocation9 + $0x47]] }
 0x1e0   : > { %v809_v22 = vadd.f32 %v807_v20, %v794_v30  ;;  %v801_v2 = vpop.permute.xlu1 %800  ;;  %v844_v30 = vmul.f32 %v842_v33, %v2616_v28  ;;  %v887_v20 = vstv %s2937_s14  ;;  %s3027_s14 = sld [smem:[#allocation9 + $0x17]] }
 0x1e1   : > { %v775_v0 = vadd.f32 %v773_v37, %v770_v43  ;;  %v855_v24 = vpop.permute.xlu0 %854  ;;  %v808_v29 = vmul.f32 %v806_v36, %v801_v2  ;;  %v902_v2 = vstv %s2946_s15  ;;  %v888_v28 = vmul.f32 %v887_v20, %v2716_v46  ;;  %s3030_s15 = sld [smem:[#allocation9 + $0x48]] }
 0x1e2   : > { %v814_v38 = vadd.f32 %v812_v23, %v809_v22  ;;  %1208 = vrot.lane.b32.xlu1 %v2825_v16, %s2121_s1  ;;  %v863_v6 = vmul.f32 %v862_v63, %v855_v24  ;;  %v2969_v23 = vld [vmem:[#allocation7 + $0x5] sm:$0xff]  ;;  %v849_v22 = vmul.f32 %v847_v21, %v2530_v15  ;;  %v922_v46 = vstv %s2960_s19  ;;  %s3048_s19 = sld [smem:[#allocation9 + $0x49]] }
 0x1e3   : > { %v790_v53 = vadd.f32 %v788_v61, %v775_v0  ;;  %1226 = vrot.lane.b32.xlu0 %v2799_v59, %s2122_s26  ;;  %v907_v61 = vstv %s2950_s16  ;;  %s3039_s16 = sld [smem:[#allocation9 + $0x18]] }
 0x1e4   : > { %v829_v1 = vadd.f32 %v827_v48, %v814_v38  ;;  %v821_v54 = vpop.permute.xlu1 %820  ;;  %v2981_v48 = vld [vmem:[#allocation6 + $0xd] sm:$0xff] }
 0x1e5   : > { %v795_v14 = vadd.f32 %v793_v9, %v790_v53  ;;  %v875_v50 = vpop.permute.xlu0 %874  ;;  %v828_v8 = vmul.f32 %v826_v44, %v821_v54  ;;  %v869_v53 = vmul.f32 %v867_v11, %v2724_v47  ;;  %v947_v11 = vstv %s2979_s13  ;;  %s3072_s13 = sld [smem:[#allocation9 + $0x1a]] }
 0x1e6   : > { %v834_v32 = vadd.f32 %v832_v40, %v829_v1  ;;  %1212 = vrot.lane.b32.xlu1 %v2839_v58, %s2121_s1  ;;  %v883_v44 = vmul.f32 %v882_v12, %v875_v50  ;;  %v908_v1 = vmul.f32 %v907_v61, %v2728_v49  ;;  %v889_v49 = vmul.f32 %v887_v20, %v2737_v52 }
 0x1e7   : > { %v810_v7 = vadd.f32 %v808_v29, %v795_v14  ;;  %1230 = vrot.lane.b32.xlu0 %v2813_v57, %s2122_s26  ;;  %v927_v14 = vstv %s2965_s27  ;;  %v909_v52 = vmul.f32 %v907_v61, %v2751_v51  ;;  %s3058_s27 = sld [smem:[#allocation9 + $0x19]] }
 0x1e8   : > { %v845_v35 = vadd.f32 %v843_v41, %v834_v32  ;;  %v857_v55 = vpop.permute.xlu1 %856  ;;  %v2993_v41 = vld [vmem:[#allocation7 + $0xd] sm:$0xff] }
 0x1e9   : > { %v815_v25 = vadd.f32 %v813_v34, %v810_v7  ;;  %v895_v36 = vpop.permute.xlu0 %894  ;;  %v864_v38 = vmul.f32 %v862_v63, %v857_v55  ;;  %v942_v63 = vstv %s2975_s8  ;;  %s3065_s8 = sld [smem:[#allocation9 + $0x4a]] }
 0x1ea   : > { %v850_v18 = vadd.f32 %v848_v17, %v845_v35  ;;  %1228 = vrot.lane.b32.xlu1 %v2825_v16, %s2122_s26  ;;  %v903_v9 = vmul.f32 %v902_v2, %v895_v36  ;;  %v928_v17 = vmul.f32 %v927_v14, %v2741_v56  ;;  %v948_v56 = vmul.f32 %v947_v11, %v2756_v60 }
 0x1eb   : > { %v830_v26 = vadd.f32 %v828_v8, %v815_v25  ;;  %1262 = vrot.lane.b32.xlu0 %v2954_v31, %s2117_s9 }
 0x1ec   : > { %v865_v13 = vadd.f32 %v863_v6, %v850_v18  ;;  %v877_v27 = vpop.permute.xlu1 %876 }
 0x1ed   : > { %v835_v37 = vadd.f32 %v833_v4, %v830_v26  ;;  %v915_v45 = vpop.permute.xlu0 %914  ;;  %v884_v50 = vmul.f32 %v882_v12, %v877_v27  ;;  %v962_v26 = vstv %s2989_s17  ;;  %s3079_s17 = sld [smem:[#allocation9 + $0x4b]] }
 0x1ee   : > { %v870_v43 = vadd.f32 %v868_v5, %v865_v13  ;;  %1232 = vrot.lane.b32.xlu1 %v2839_v58, %s2122_s26  ;;  %v923_v34 = vmul.f32 %v922_v46, %v915_v45  ;;  %v978_v45 = vstv %s2999_s28  ;;  %s3193_s28 = sld [smem:[#allocation9 + $0x1e]] }
 0x1ef   : > { %v846_v42 = vadd.f32 %v844_v30, %v835_v37  ;;  %1266 = vrot.lane.b32.xlu0 %v2969_v23, %s2117_s9  ;;  %v967_v30 = vstv %s2995_s12  ;;  %v979_v61 = vmul.f32 %v978_v45, %v2660_v10  ;;  %s3187_s12 = sld [smem:[#allocation9 + $0x4e]] }
 0x1f0   : > { %v885_v3 = vadd.f32 %v883_v44, %v870_v43  ;;  %v897_v0 = vpop.permute.xlu1 %896  ;;  %v929_v43 = vmul.f32 %v927_v14, %v2766_v62 }
 0x1f1   : > { %v851_v24 = vadd.f32 %v849_v22, %v846_v42  ;;  %v935_v15 = vpop.permute.xlu0 %934  ;;  %v904_v8 = vmul.f32 %v902_v2, %v897_v0  ;;  %v983_v2 = vstv %s3006_s29  ;;  %s3203_s29 = sld [smem:[#allocation9 + $0x1f]] }
 0x1f2   : > { %v890_v33 = vadd.f32 %v888_v28, %v885_v3  ;;  %1264 = vrot.lane.b32.xlu1 %v2981_v48, %s2117_s9  ;;  %v943_v6 = vmul.f32 %v942_v63, %v935_v15 }
 0x1f3   : > { %v866_v40 = vadd.f32 %v864_v38, %v851_v24  ;;  %1282 = vrot.lane.b32.xlu0 %v2954_v31, %s2118_s18  ;;  %v3480_v24 = vld [vmem:[#allocation24_spill] sm:$0xff] }
 0x1f4   : > { %v905_v54 = vadd.f32 %v903_v9, %v890_v33  ;;  %v917_v21 = vpop.permute.xlu1 %916  ;;  %v949_v38 = vmul.f32 %v947_v11, %v3480_v24  ;;  %v998_v33 = vstv %s3015_s30  ;;  %v3481_v9 = vld [vmem:[#allocation23_spill] sm:$0xff]  ;;  %v1063_v24 = vstv %s3065_s8  ;;  %s3209_s30 = sld [smem:[#allocation9 + $0x50]] }
 0x1f5   : > { %v871_v29 = vadd.f32 %v869_v53, %v866_v40  ;;  %v955_v32 = vpop.permute.xlu0 %954  ;;  %v924_v27 = vmul.f32 %v922_v46, %v917_v21  ;;  %v984_v53 = vmul.f32 %v983_v2, %v3481_v9  ;;  %s3266_s8 = sld [smem:[#allocation9 + $0x23]] }
 0x1f6   : > { %v910_v47 = vadd.f32 %v908_v1, %v905_v54  ;;  %1268 = vrot.lane.b32.xlu1 %v2993_v41, %s2117_s9  ;;  %v963_v37 = vmul.f32 %v962_v26, %v955_v32  ;;  %v1003_v54 = vstv %s3019_s6  ;;  %s3215_s6 = sld [smem:[#allocation9 + $0x20]] }
 0x1f7   : > { %v886_v7 = vadd.f32 %v884_v50, %v871_v29  ;;  %1286 = vrot.lane.b32.xlu0 %v2969_v23, %s2118_s18 }
 0x1f8   : > { %v925_v35 = vadd.f32 %v923_v34, %v910_v47  ;;  %v937_v55 = vpop.permute.xlu1 %936  ;;  %v1018_v47 = vstv %s3027_s14  ;;  %s3222_s14 = sld [smem:[#allocation9 + $0x51]] }
 0x1f9   : > { %v891_v25 = vadd.f32 %v889_v49, %v886_v7  ;;  %v959_v36 = vpop.permute.xlu0 %958  ;;  %v944_v3 = vmul.f32 %v942_v63, %v937_v55  ;;  %v980_v63 = vmul.f32 %v978_v45, %v2678_v19 }
 0x1fa   : > { %v930_v18 = vadd.f32 %v928_v17, %v925_v35  ;;  %1284 = vrot.lane.b32.xlu1 %v2981_v48, %s2118_s18  ;;  %v968_v22 = vmul.f32 %v967_v30, %v959_v36  ;;  %v1023_v35 = vstv %s3030_s15  ;;  %s3228_s15 = sld [smem:[#allocation9 + $0x21]] }
 0x1fb   : > { %v906_v4 = vadd.f32 %v904_v8, %v891_v25  ;;  %1302 = vrot.lane.b32.xlu0 %v2954_v31, %s2119_s0  ;;  %v985_v8 = vmul.f32 %v983_v2, %v2688_v39 }
 0x1fc   : > { %v945_v12 = vadd.f32 %v943_v6, %v930_v18  ;;  %v957_v5 = vpop.permute.xlu1 %956  ;;  %v1038_v18 = vstv %s3039_s16  ;;  %s3235_s16 = sld [smem:[#allocation9 + $0x52]] }
 0x1fd   : > { %v911_v13 = vadd.f32 %v909_v52, %v906_v4  ;;  %v991_v20 = vpop.permute.xlu0 %990  ;;  %v964_v10 = vmul.f32 %v962_v26, %v957_v5 }
 0x1fe   : > { %v950_v51 = vadd.f32 %v948_v56, %v945_v12  ;;  %1288 = vrot.lane.b32.xlu1 %v2993_v41, %s2118_s18  ;;  %v999_v29 = vmul.f32 %v998_v33, %v991_v20 }
 0x1ff   : > { %v926_v44 = vadd.f32 %v924_v27, %v911_v13  ;;  %1306 = vrot.lane.b32.xlu0 %v2969_v23, %s2119_s0  ;;  %v1043_v27 = vstv %s3048_s19  ;;  %s3242_s19 = sld [smem:[#allocation9 + $0x22]] }
 0x200   : > { %v965_v60 = vadd.f32 %v963_v37, %v950_v51  ;;  %v961_v42 = vpop.permute.xlu1 %960 }
 0x201   : > { %v931_v28 = vadd.f32 %v929_v43, %v926_v44  ;;  %v995_v0 = vpop.permute.xlu0 %994  ;;  %v969_v32 = vmul.f32 %v967_v30, %v961_v42 }
 0x202   : > { %v970_v62 = vadd.f32 %v968_v22, %v965_v60  ;;  %1304 = vrot.lane.b32.xlu1 %v2981_v48, %s2119_s0  ;;  %v1004_v49 = vmul.f32 %v1003_v54, %v995_v0  ;;  %v1058_v22 = vstv %s3058_s27  ;;  %s3249_s27 = sld [smem:[#allocation9 + $0x53]] }
 0x203   : > { %v946_v15 = vadd.f32 %v944_v3, %v931_v28  ;;  %1322 = vrot.lane.b32.xlu0 %v2954_v31, %s2120_s3 }
 0x204   : > { %v981_v40 = vadd.f32 %v979_v61, %v970_v62  ;;  %v993_v46 = vpop.permute.xlu1 %992 }
 0x205   : > { %v951_v1 = vadd.f32 %v949_v38, %v946_v15  ;;  %v1011_v21 = vpop.permute.xlu0 %1010  ;;  %v1000_v26 = vmul.f32 %v998_v33, %v993_v46 }
 0x206   : > { %v986_v14 = vadd.f32 %v984_v53, %v981_v40  ;;  %1308 = vrot.lane.b32.xlu1 %v2993_v41, %s2119_s0  ;;  %v1019_v25 = vmul.f32 %v1018_v47, %v1011_v21  ;;  %v3083_v40 = vld [vmem:[#allocation6 + $0x6] sm:$0xff] }
 0x207   : > { %v966_v50 = vadd.f32 %v964_v10, %v951_v1  ;;  %1326 = vrot.lane.b32.xlu0 %v2969_v23, %s2120_s3  ;;  %v1078_v1 = vstv %s3072_s13  ;;  %s3277_s13 = sld [smem:[#allocation9 + $0x54]] }
 0x208   : > { %v1001_v34 = vadd.f32 %v999_v29, %v986_v14  ;;  %v997_v7 = vpop.permute.xlu1 %996 }
 0x209   : > { %v971_v17 = vadd.f32 %v969_v32, %v966_v50  ;;  %v1015_v55 = vpop.permute.xlu0 %1014  ;;  %v1005_v13 = vmul.f32 %v1003_v54, %v997_v7  ;;  %v3090_v50 = vld [vmem:[#allocation7 + $0x6] sm:$0xff] }
 0x20a   : > { %v1006_v11 = vadd.f32 %v1004_v49, %v1001_v34  ;;  %1324 = vrot.lane.b32.xlu1 %v2981_v48, %s2120_s3  ;;  %v1024_v52 = vmul.f32 %v1023_v35, %v1015_v55 }
 0x20b   : > { %v982_v36 = vadd.f32 %v980_v63, %v971_v17  ;;  %1342 = vrot.lane.b32.xlu0 %v2954_v31, %s2121_s1  ;;  %v3095_v63 = vld [vmem:[#allocation6 + $0xe] sm:$0xff] }
 0x20c   : > { %v1021_v6 = vadd.f32 %v1019_v25, %v1006_v11  ;;  %v1013_v19 = vpop.permute.xlu1 %1012 }
 0x20d   : > { %v987_v4 = vadd.f32 %v985_v8, %v982_v36  ;;  %v1031_v56 = vpop.permute.xlu0 %1030  ;;  %v1020_v37 = vmul.f32 %v1018_v47, %v1013_v19  ;;  %v1083_v47 = vstv %s3079_s17  ;;  %v3101_v36 = vld [vmem:[#allocation7 + $0xe] sm:$0xff]  ;;  %s3285_s17 = sld [smem:[#allocation9 + $0x24]] }
 0x20e   : > { %v1026_v12 = vadd.f32 %v1024_v52, %v1021_v6  ;;  %1328 = vrot.lane.b32.xlu1 %v2993_v41, %s2120_s3  ;;  %v1039_v5 = vmul.f32 %v1038_v18, %v1031_v56 }
 0x20f   : > { %v1002_v39 = vadd.f32 %v1000_v26, %v987_v4  ;;  %1346 = vrot.lane.b32.xlu0 %v2969_v23, %s2121_s1 }
 0x210   : > { %v1017_v30 = vpop.permute.xlu1 %1016  ;;  %v1041_v20 = vadd.f32 %v1039_v5, %v1026_v12 }
 0x211   : > { %v1007_v51 = vadd.f32 %v1005_v13, %v1002_v39  ;;  %v1035_v45 = vpop.permute.xlu0 %1034  ;;  %v1025_v60 = vmul.f32 %v1023_v35, %v1017_v30 }
 0x212   : > { %1344 = vrot.lane.b32.xlu1 %v2981_v48, %s2121_s1  ;;  %v1044_v43 = vmul.f32 %v1043_v27, %v1035_v45 }
 0x213   : > { %v1022_v44 = vadd.f32 %v1020_v37, %v1007_v51  ;;  %1362 = vrot.lane.b32.xlu0 %v2954_v31, %s2122_s26 }
 0x214   : > { %v1033_v42 = vpop.permute.xlu1 %1032  ;;  %v1046_v2 = vadd.f32 %v1044_v43, %v1041_v20 }
 0x215   : > { %v1027_v28 = vadd.f32 %v1025_v60, %v1022_v44  ;;  %v1040_v3 = vmul.f32 %v1038_v18, %v1033_v42  ;;  %v1051_v0 = vpop.permute.xlu0 %1050 }
 0x216   : > { %1348 = vrot.lane.b32.xlu1 %v2993_v41, %s2121_s1  ;;  %v1059_v61 = vmul.f32 %v1058_v22, %v1051_v0 }
 0x217   : > { %v1042_v62 = vadd.f32 %v1040_v3, %v1027_v28  ;;  %1366 = vrot.lane.b32.xlu0 %v2969_v23, %s2122_s26 }
 0x218   : > { %v1037_v38 = vpop.permute.xlu1 %1036  ;;  %v1061_v15 = vadd.f32 %v1059_v61, %v1046_v2 }
 0x219   : > { %v1045_v33 = vmul.f32 %v1043_v27, %v1037_v38  ;;  %v1055_v9 = vpop.permute.xlu0 %1054 }
 0x21a   : > { %1364 = vrot.lane.b32.xlu1 %v2981_v48, %s2122_s26  ;;  %v1064_v53 = vmul.f32 %v1063_v24, %v1055_v9 }
 0x21b   : > { %v1047_v46 = vadd.f32 %v1045_v33, %v1042_v62  ;;  %1398 = vrot.lane.b32.xlu0 %v3083_v40, %s2117_s9 }
 0x21c   : > { %v1053_v10 = vpop.permute.xlu1 %1052  ;;  %v1066_v54 = vadd.f32 %v1064_v53, %v1061_v15 }
 0x21d   : > { %v1060_v21 = vmul.f32 %v1058_v22, %v1053_v10  ;;  %v1071_v14 = vpop.permute.xlu0 %1070 }
 0x21e   : > { %1368 = vrot.lane.b32.xlu1 %v2993_v41, %s2122_s26  ;;  %v1079_v29 = vmul.f32 %v1078_v1, %v1071_v14 }
 0x21f   : > { %v1062_v32 = vadd.f32 %v1060_v21, %v1047_v46  ;;  %1402 = vrot.lane.b32.xlu0 %v3090_v50, %s2117_s9 }
 0x220   : > { %v1057_v34 = vpop.permute.xlu1 %1056  ;;  %v1081_v49 = vadd.f32 %v1079_v29, %v1066_v54 }
 0x221   : > { %v1065_v7 = vmul.f32 %v1063_v24, %v1057_v34  ;;  %v1075_v17 = vpop.permute.xlu0 %1074 }
 0x222   : > { %1400 = vrot.lane.b32.xlu1 %v3095_v63, %s2117_s9  ;;  %v1084_v35 = vmul.f32 %v1083_v47, %v1075_v17  ;;  %v1139_v17 = vstv %s3187_s12  ;;  %s3311_s12 = sld [smem:[#allocation9 + $0x27]] }
 0x223   : > { %v1067_v55 = vadd.f32 %v1065_v7, %v1062_v32  ;;  %1418 = vrot.lane.b32.xlu0 %v3083_v40, %s2118_s18 }
 0x224   : > { %v1073_v11 = vpop.permute.xlu1 %1072  ;;  %v1086_v25 = vadd.f32 %v1084_v35, %v1081_v49 }
 0x225   : > { %v1080_v8 = vmul.f32 %v1078_v1, %v1073_v11  ;;  %v1091_v18 = vpop.permute.xlu0 %1090 }
 0x226   : > { %1404 = vrot.lane.b32.xlu1 %v3101_v36, %s2117_s9  ;;  %s1762_s9 = sld [smem:[#allocation9 + $0x1b]] }
 0x227   : > { %v1082_v6 = vadd.f32 %v1080_v8, %v1067_v55  ;;  %1422 = vrot.lane.b32.xlu0 %v3090_v50, %s2118_s18 }
 0x228   : > { %v1077_v19 = vpop.permute.xlu1 %1076 }
 0x229   : > { %v1085_v52 = vmul.f32 %v1083_v47, %v1077_v19  ;;  %v1095_v4 = vpop.permute.xlu0 %1094 }
 0x22a   : > { %1420 = vrot.lane.b32.xlu1 %v3095_v63, %s2118_s18 }
 0x22b   : > { %v1087_v26 = vadd.f32 %v1085_v52, %v1082_v6  ;;  %1438 = vrot.lane.b32.xlu0 %v3083_v40, %s2119_s0 }
 0x22c   : > { %v1093_v56 = vpop.permute.xlu1 %1092  ;;  %v1098_v22 = vstv %s1762_s9  ;;  %s3290_s9 = sld [smem:[#allocation9 + $0x55]] }
 0x22d   : > { %v3111_v12 = vpop.permute.xlu0 %1126  ;;  %v1099_v3 = vmul.f32 %v1098_v22, %v1091_v18  ;;  %v1100_v9 = vmul.f32 %v1098_v22, %v1093_v56 }
 0x22e   : > { %1424 = vrot.lane.b32.xlu1 %v3101_v36, %s2118_s18  ;;  %s3149_s18 = sld [smem:[#allocation9 + $0x4c]] }
 0x22f   : > { %1442 = vrot.lane.b32.xlu0 %v3090_v50, %s2119_s0  ;;  %v1101_v24 = vadd.f32 %v1099_v3, %v1086_v25  ;;  %v1102_v14 = vadd.f32 %v1100_v9, %v1087_v26  ;;  %v1174_v26 = vstv %s3203_s29  ;;  %v1199_v9 = vstv %s3222_s14  ;;  %s3325_s29 = sld [smem:[#allocation9 + $0x59]] }
 0x230   : > { %v1097_v5 = vpop.permute.xlu1 %1096  ;;  %s3342_s14 = sld [smem:[#allocation9 + $0x2a]] }
 0x231   : > { %v3117_v39 = vpop.permute.xlu0 %1130 }
 0x232   : > { %1440 = vrot.lane.b32.xlu1 %v3095_v63, %s2119_s0  ;;  %v1140_v8 = vmul.f32 %v1139_v17, %v3117_v39  ;;  %v1179_v39 = vstv %s3209_s30  ;;  %s3330_s30 = sld [smem:[#allocation9 + $0x29]] }
 0x233   : > { %1458 = vrot.lane.b32.xlu0 %v3083_v40, %s2120_s3 }
 0x234   : > { %v3123_v13 = vpop.permute.xlu1 %1128  ;;  %v1103_v2 = vstv %s3149_s18  ;;  %s3295_s18 = sld [smem:[#allocation9 + $0x25]] }
 0x235   : > { %v3125_v27 = vpop.permute.xlu0 %1146  ;;  %v1104_v0 = vmul.f32 %v1103_v2, %v1095_v4  ;;  %v1105_v10 = vmul.f32 %v1103_v2, %v1097_v5 }
 0x236   : > { %1444 = vrot.lane.b32.xlu1 %v3101_v36, %s2119_s0  ;;  %s3163_s0 = sld [smem:[#allocation9 + $0x1c]] }
 0x237   : > { %1462 = vrot.lane.b32.xlu0 %v3090_v50, %s2120_s3  ;;  %v1106_v15 = vadd.f32 %v1104_v0, %v1101_v24  ;;  %v1107_v47 = vadd.f32 %v1105_v10, %v1102_v14  ;;  %v1194_v24 = vstv %s3215_s6  ;;  %s3334_s6 = sld [smem:[#allocation9 + $0x5a]] }
 0x238   : > { %v3131_v30 = vpop.permute.xlu1 %1132 }
 0x239   : > { %v3133_v20 = vpop.permute.xlu0 %1150  ;;  %v1141_v0 = vmul.f32 %v1139_v17, %v3131_v30 }
 0x23a   : > { %1460 = vrot.lane.b32.xlu1 %v3095_v63, %s2120_s3 }
 0x23b   : > { %1478 = vrot.lane.b32.xlu0 %v3083_v40, %s2121_s1 }
 0x23c   : > { %v3139_v51 = vpop.permute.xlu1 %1148  ;;  %v1114_v38 = vstv %s3163_s0  ;;  %s3299_s0 = sld [smem:[#allocation9 + $0x56]] }
 0x23d   : > { %v3141_v37 = vpop.permute.xlu0 %1166  ;;  %v1115_v46 = vmul.f32 %v1114_v38, %v2799_v59  ;;  %v1116_v7 = vmul.f32 %v1114_v38, %v2825_v16 }
 0x23e   : > { %1464 = vrot.lane.b32.xlu1 %v3101_v36, %s2120_s3  ;;  %s3174_s3 = sld [smem:[#allocation9 + $0x4d]] }
 0x23f   : > { %1482 = vrot.lane.b32.xlu0 %v3090_v50, %s2121_s1  ;;  %v1117_v54 = vadd.f32 %v1115_v46, %v1106_v15  ;;  %v1118_v11 = vadd.f32 %v1116_v7, %v1107_v47 }
 0x240   : > { %v3147_v45 = vpop.permute.xlu1 %1152 }
 0x241   : > { %v3151_v43 = vpop.permute.xlu0 %1170 }
 0x242   : > { %1480 = vrot.lane.b32.xlu1 %v3095_v63, %s2121_s1  ;;  %v1180_v38 = vmul.f32 %v1179_v39, %v3151_v43 }
 0x243   : > { %1498 = vrot.lane.b32.xlu0 %v3083_v40, %s2122_s26 }
 0x244   : > { %v3157_v44 = vpop.permute.xlu1 %1168  ;;  %v1119_v1 = vstv %s3174_s3  ;;  %s3303_s3 = sld [smem:[#allocation9 + $0x26]] }
 0x245   : > { %v3159_v60 = vpop.permute.xlu0 %1186  ;;  %v1120_v32 = vmul.f32 %v1119_v1, %v2813_v57  ;;  %v1154_v57 = vstv %s3193_s28  ;;  %v1121_v16 = vmul.f32 %v1119_v1, %v2839_v58  ;;  %v1176_v47 = vmul.f32 %v1174_v26, %v3157_v44  ;;  %s3316_s28 = sld [smem:[#allocation9 + $0x58]] }
 0x246   : > { %1484 = vrot.lane.b32.xlu1 %v3101_v36, %s2121_s1  ;;  %s3183_s1 = sld [smem:[#allocation9 + $0x1d]]  ;;  %v1155_v52 = vmul.f32 %v1154_v57, %v3125_v27  ;;  %v1175_v27 = vmul.f32 %v1174_v26, %v3141_v37  ;;  %v1156_v15 = vmul.f32 %v1154_v57, %v3139_v51  ;;  %v1195_v30 = vmul.f32 %v1194_v24, %v3159_v60 }
 0x247   : > { %1502 = vrot.lane.b32.xlu0 %v3090_v50, %s2122_s26  ;;  %v1122_v59 = vadd.f32 %v1120_v32, %v1117_v54  ;;  %v1123_v4 = vadd.f32 %v1121_v16, %v1118_v11  ;;  %v1214_v54 = vstv %s3228_s15  ;;  %s3345_s15 = sld [smem:[#allocation9 + $0x5b]] }
 0x248   : > { %v3167_v42 = vpop.permute.xlu1 %1172 }
 0x249   : > { %v3170_v28 = vpop.permute.xlu0 %1190 }
 0x24a   : > { %1500 = vrot.lane.b32.xlu1 %v3095_v63, %s2122_s26  ;;  %v1200_v43 = vmul.f32 %v1199_v9, %v3170_v28 }
 0x24c   : > { %v3176_v61 = vpop.permute.xlu1 %1188  ;;  %v1134_v34 = vstv %s3183_s1  ;;  %s3307_s1 = sld [smem:[#allocation9 + $0x57]] }
 0x24d   : > { %v3178_v62 = vpop.permute.xlu0 %1206  ;;  %v1135_v55 = vmul.f32 %v1134_v34, %v3111_v12  ;;  %v1136_v58 = vmul.f32 %v1134_v34, %v3123_v13  ;;  %v1219_v34 = vstv %s3235_s16  ;;  %v1196_v44 = vmul.f32 %v1194_v24, %v3176_v61  ;;  %s3348_s16 = sld [smem:[#allocation9 + $0x2b]] }
 0x24e   : > { %1504 = vrot.lane.b32.xlu1 %v3101_v36, %s2122_s26  ;;  %s3197_s26 = sld [smem:[#allocation9 + $0x4f]]  ;;  %v1215_v17 = vmul.f32 %v1214_v54, %v3178_v62 }
 0x24f   : > { %v1137_v25 = vadd.f32 %v1135_v55, %v1122_v59  ;;  %v1138_v3 = vadd.f32 %v1136_v58, %v1123_v4  ;;  %v1181_v55 = vmul.f32 %v1179_v39, %v3167_v42 }
 0x250   : > { %v3185_v33 = vpop.permute.xlu1 %1192 }
 0x251   : > { %v3189_v53 = vpop.permute.xlu0 %1210  ;;  %v1142_v56 = vadd.f32 %v1140_v8, %v1137_v25  ;;  %v1143_v1 = vadd.f32 %v1141_v0, %v1138_v3  ;;  %v1239_v8 = vstv %s3249_s27  ;;  %v1201_v42 = vmul.f32 %v1199_v9, %v3185_v33  ;;  %s3354_s27 = sld [smem:[#allocation9 + $0x2c]] }
 0x252   : > { %v1220_v28 = vmul.f32 %v1219_v34, %v3189_v53 }
 0x253   : > { %v1157_v2 = vadd.f32 %v1155_v52, %v1142_v56  ;;  %v1158_v51 = vadd.f32 %v1156_v15, %v1143_v1  ;;  %v1270_v1 = vstv %s3285_s17  ;;  %s3364_s17 = sld [smem:[#allocation9 + $0x5e]] }
 0x254   : > { %v3195_v21 = vpop.permute.xlu1 %1208  ;;  %v1159_v6 = vstv %s3197_s26  ;;  %s3320_s26 = sld [smem:[#allocation9 + $0x28]] }
 0x255   : > { %v3199_v29 = vpop.permute.xlu0 %1226  ;;  %v1160_v12 = vmul.f32 %v1159_v6, %v3133_v20  ;;  %v1161_v10 = vmul.f32 %v1159_v6, %v3147_v45  ;;  %v1234_v45 = vstv %s3242_s19  ;;  %v1216_v61 = vmul.f32 %v1214_v54, %v3195_v21  ;;  %s3350_s19 = sld [smem:[#allocation9 + $0x5c]] }
 0x256   : > { %v1235_v62 = vmul.f32 %v1234_v45, %v3199_v29  ;;  %v1250_v29 = vstv %s3266_s8  ;;  %v1275_v54 = vstv %s3290_s9  ;;  %s3356_s8 = sld [smem:[#allocation9 + $0x5d]] }
 0x257   : > { %v1162_v20 = vadd.f32 %v1160_v12, %v1157_v2  ;;  %v1163_v60 = vadd.f32 %v1161_v10, %v1158_v51  ;;  %v1251_v21 = vmul.f32 %v1250_v29, %v2954_v31  ;;  %v1252_v10 = vmul.f32 %v1250_v29, %v2981_v48  ;;  %s3367_s9 = sld [smem:[#allocation9 + $0x2e]] }
 0x258   : > { %v3205_v49 = vpop.permute.xlu1 %1212 }
 0x259   : > { %v3211_v35 = vpop.permute.xlu0 %1230  ;;  %v1177_v37 = vadd.f32 %v1175_v27, %v1162_v20  ;;  %v1178_v25 = vadd.f32 %v1176_v47, %v1163_v60  ;;  %v1221_v2 = vmul.f32 %v1219_v34, %v3205_v49  ;;  %v1255_v49 = vstv %s3277_s13  ;;  %s3360_s13 = sld [smem:[#allocation9 + $0x2d]] }
 0x25a   : > { %v1240_v53 = vmul.f32 %v1239_v8, %v3211_v35  ;;  %v1290_v47 = vstv %s3295_s18  ;;  %v1295_v60 = vstv %s3299_s0  ;;  %s3371_s18 = sld [smem:[#allocation9 + $0x5f]] }
 0x25b   : > { %v1182_v14 = vadd.f32 %v1180_v38, %v1177_v37  ;;  %v1183_v52 = vadd.f32 %v1181_v55, %v1178_v25  ;;  %v1256_v37 = vmul.f32 %v1255_v49, %v2969_v23  ;;  %s3374_s0 = sld [smem:[#allocation9 + $0x2f]] }
 0x25c   : > { %v3218_v18 = vpop.permute.xlu1 %1228 }
 0x25d   : > { %v3224_v19 = vpop.permute.xlu0 %1262  ;;  %v1197_v7 = vadd.f32 %v1195_v30, %v1182_v14  ;;  %v1198_v56 = vadd.f32 %v1196_v44, %v1183_v52  ;;  %v1236_v35 = vmul.f32 %v1234_v45, %v3218_v18  ;;  %v1315_v44 = vstv %s3307_s1  ;;  %s3380_s1 = sld [smem:[#allocation9 + $0x30]] }
 0x25e   : > { %v1330_v52 = vstv %s3311_s12  ;;  %s3384_s12 = sld [smem:[#allocation9 + $0x61]] }
 0x25f   : > { %v1202_v11 = vadd.f32 %v1200_v43, %v1197_v7  ;;  %v1203_v39 = vadd.f32 %v1201_v42, %v1198_v56  ;;  %v1271_v43 = vmul.f32 %v1270_v1, %v3224_v19  ;;  %v1310_v19 = vstv %s3303_s3  ;;  %s3377_s3 = sld [smem:[#allocation9 + $0x60]] }
 0x260   : > { %v3231_v5 = vpop.permute.xlu1 %1232 }
 0x261   : > { %v3237_v22 = vpop.permute.xlu0 %1266  ;;  %v1217_v6 = vadd.f32 %v1215_v17, %v1202_v11  ;;  %v1218_v3 = vadd.f32 %v1216_v61, %v1203_v39  ;;  %v1241_v20 = vmul.f32 %v1239_v8, %v3231_v5  ;;  %v1257_v17 = vmul.f32 %v1255_v49, %v2993_v41 }
 0x262   : > { %v1276_v34 = vmul.f32 %v1275_v54, %v3237_v22 }
 0x263   : > { %v1222_v4 = vadd.f32 %v1220_v28, %v1217_v6  ;;  %v1223_v24 = vadd.f32 %v1221_v2, %v1218_v3 }
 0x264   : > { %v3245_v13 = vpop.permute.xlu1 %1264 }
 0x265   : > { %v3251_v46 = vpop.permute.xlu0 %1282  ;;  %v1237_v58 = vadd.f32 %v1235_v62, %v1222_v4  ;;  %v1238_v9 = vadd.f32 %v1236_v35, %v1223_v24  ;;  %v1272_v22 = vmul.f32 %v1270_v1, %v3245_v13  ;;  %v1355_v35 = vstv %s3325_s29  ;;  %s1816_s29 = sshll.u32 %s2099_s23, 8  ;;  %s2123_s23 = smov [#allocation17]  }
 0x266   : > { %v1291_v55 = vmul.f32 %v1290_v47, %v3251_v46 }
 0x267   : > { %v1242_v33 = vadd.f32 %v1240_v53, %v1237_v58  ;;  %v1243_v30 = vadd.f32 %v1241_v20, %v1238_v9  ;;  %v1335_v53 = vstv %s3316_s28  ;;  %s1708_s28 = sshll.u32 %s2326_s2, 4 }
 0x268   : > { %v3257_v32 = vpop.permute.xlu1 %1268 }
 0x269   : > { %v3261_v59 = vpop.permute.xlu0 %1286  ;;  %v1253_v38 = vadd.f32 %v1251_v21, %v1242_v33  ;;  %v1254_v51 = vadd.f32 %v1252_v10, %v1243_v30  ;;  %v1277_v62 = vmul.f32 %v1275_v54, %v3257_v32  ;;  %v1350_v32 = vstv %s3320_s26  ;;  %s361_s26 = scalar_lea.vmem [#allocation17], %s1708_s28 }
 0x26a   : > { %v1296_v28 = vmul.f32 %v1295_v60, %v3261_v59  ;;  %v1375_v30 = vstv %s3334_s6 }
 0x26b   : > { %v1258_v31 = vadd.f32 %v1256_v37, %v1253_v38  ;;  %v1259_v45 = vadd.f32 %v1257_v17, %v1254_v51  ;;  %v1370_v38 = vstv %s3330_s30  ;;  %s1544_s30 = sshll.u32 %s361_s26, 4  ;;  %s3396_s30 = int_to_ptr.vmem [resolvable:$true] %s1544_s30 }
 0x26c   : > { %v3269_v57 = vpop.permute.xlu1 %1284 }
 0x26d   : > { %v3273_v16 = vpop.permute.xlu0 %1302  ;;  %v1273_v23 = vadd.f32 %v1271_v43, %v1258_v31  ;;  %v1274_v46 = vadd.f32 %v1272_v22, %v1259_v45  ;;  %v1292_v13 = vmul.f32 %v1290_v47, %v3269_v57  ;;  %v1391_v22 = vstv %s3345_s15  ;;  %s3394_s15 = scalar_lea.hbm %s3449_s5, %s1816_s29 }
 0x26e   : > { %v1311_v6 = vmul.f32 %v1310_v19, %v3273_v16 }
 0x26f   : > { %v1278_v11 = vadd.f32 %v1276_v34, %v1273_v23  ;;  %v1279_v58 = vadd.f32 %v1277_v62, %v1274_v46  ;;  %v1392_v46 = vmul.f32 %v1391_v22, %v3090_v50 }
 0x270   : > { %v3280_v26 = vpop.permute.xlu1 %1288 }
 0x271   : > { %v1307_v12 = vpop.permute.xlu0 %1306  ;;  %v1293_v8 = vadd.f32 %v1291_v55, %v1278_v11  ;;  %v1297_v39 = vmul.f32 %v1295_v60, %v3280_v26 }
 0x272   : > { %v1316_v59 = vmul.f32 %v1315_v44, %v1307_v12  ;;  %v1294_v12 = vadd.f32 %v1292_v13, %v1279_v58 }
 0x273   : > { %v1298_v42 = vadd.f32 %v1296_v28, %v1293_v8 }
 0x274   : > { %v3287_v27 = vpop.permute.xlu1 %1304  ;;  %v1299_v20 = vadd.f32 %v1297_v39, %v1294_v12  ;;  %v1393_v39 = vmul.f32 %v1391_v22, %v3101_v36 }
 0x275   : > { %v1323_v0 = vpop.permute.xlu0 %1322  ;;  %v1313_v61 = vadd.f32 %v1311_v6, %v1298_v42  ;;  %v1312_v3 = vmul.f32 %v1310_v19, %v3287_v27 }
 0x276   : > { %v1331_v16 = vmul.f32 %v1330_v52, %v1323_v0 }
 0x277   : > { %v1318_v2 = vadd.f32 %v1316_v59, %v1313_v61  ;;  %v1314_v37 = vadd.f32 %v1312_v3, %v1299_v20  ;;  %v1426_v61 = vstv %s3354_s27  ;;  %s2023_s27 = sshll.u32 %s2123_s23, 4  ;;  %s2024_s27 = int_to_ptr.vmem [resolvable:$false] %s2023_s27 }
 0x278   : > { %v3297_v15 = vpop.permute.xlu1 %1308  ;;  %p2026_p5 = scmp.lt.s32.totalorder %s3396_s30, %s2024_s27 }
 0x279   : > { %v1327_v18 = vpop.permute.xlu0 %1326  ;;  %v1333_v21 = vadd.f32 %v1331_v16, %v1318_v2  ;;  %v1317_v49 = vmul.f32 %v1315_v44, %v3297_v15 }
 0x27a   : > { %v1336_v29 = vmul.f32 %v1335_v53, %v1327_v18 }
 0x27b   : > { %v1319_v10 = vadd.f32 %v1317_v49, %v1314_v37 }
 0x27c   : > { %v1325_v5 = vpop.permute.xlu1 %1324  ;;  %v1338_v0 = vadd.f32 %v1336_v29, %v1333_v21  ;;  %v1451_v21 = vstv %s3364_s17 }
 0x27d   : > { %v1343_v14 = vpop.permute.xlu0 %1342  ;;  %v1332_v18 = vmul.f32 %v1330_v52, %v1325_v5  ;;  %v1386_v5 = vstv %s3342_s14  ;;  %v1406_v52 = vstv %s3348_s16  ;;  %s1531_s16 = scalar_lea.sflag [#allocation11], %s2326_s2 }
 0x27e   : > { %v1351_v24 = vmul.f32 %v1350_v32, %v1343_v14  ;;  %v1387_v11 = vmul.f32 %v1386_v5, %v3083_v40  ;;  %v1388_v59 = vmul.f32 %v1386_v5, %v3095_v63 }
 0x27f   : > { %v1334_v51 = vadd.f32 %v1332_v18, %v1319_v10 }
 0x280   : > { %v1329_v7 = vpop.permute.xlu1 %1328  ;;  %v1353_v31 = vadd.f32 %v1351_v24, %v1338_v0  ;;  %v1466_v0 = vstv %s3367_s9 }
 0x281   : > { %v1347_v48 = vpop.permute.xlu0 %1346  ;;  %v1337_v54 = vmul.f32 %v1335_v53, %v1329_v7 }
 0x282   : > { %v1356_v26 = vmul.f32 %v1355_v35, %v1347_v48 }
 0x283   : > { %v1339_v17 = vadd.f32 %v1337_v54, %v1334_v51 }
 0x284   : > { %v1345_v25 = vpop.permute.xlu1 %1344  ;;  %v1358_v14 = vadd.f32 %v1356_v26, %v1353_v31 }
 0x285   : > { %v1363_v41 = vpop.permute.xlu0 %1362  ;;  %v1352_v47 = vmul.f32 %v1350_v32, %v1345_v25  ;;  %v1431_v32 = vstv %s3356_s8  ;;  %s2025_s8 = scalar_lea.vmem %s2024_s27, 512 }
 0x286   : > { %v1371_v27 = vmul.f32 %v1370_v38, %v1363_v41 }
 0x287   : > { %v1354_v45 = vadd.f32 %v1352_v47, %v1339_v17 }
 0x288   : > { %v1349_v4 = vpop.permute.xlu1 %1348  ;;  %v1373_v34 = vadd.f32 %v1371_v27, %v1358_v14  ;;  %v1486_v14 = vstv %s3374_s0 }
 0x289   : > { %v1367_v56 = vpop.permute.xlu0 %1366  ;;  %v1357_v60 = vmul.f32 %v1355_v35, %v1349_v4  ;;  %v1411_v4 = vstv %s3350_s19  ;;  %s2019_s19 = scalar_lea.vmem %s3396_s30, 256 }
 0x28a   : > { %v1376_v43 = vmul.f32 %v1375_v30, %v1367_v56  ;;  %p2020_p7 = scmp.ne.s32.totalorder %s3396_s30, %s2019_s19  ;;  %p2027_p8 = scmp.lt.s32.totalorder %s2025_s8, %s2019_s19 }
 0x28b   : > { %v1359_v28 = vadd.f32 %v1357_v60, %v1354_v45  ;;  %v1506_v45 = vstv %s3380_s1 }
 0x28c   : > { %v1365_v33 = vpop.permute.xlu1 %1364  ;;  %v1378_v48 = vadd.f32 %v1376_v43, %v1373_v34  ;;  %v1491_v34 = vstv %s3377_s3  ;;  %p2021_p11 = pnand %p2020_p7, %p2255_p12  ;;  %p2028_p1 = por %p2027_p8, %p2026_p5 }
 0x28d   : > { %v1399_v57 = vpop.permute.xlu0 %1398  ;;  %v1372_v7 = vmul.f32 %v1370_v38, %v1365_v33  ;;  %v1446_v33 = vstv %s3360_s13 }
 0x28e   : > { %v1389_v44 = vadd.f32 %v1387_v11, %v1378_v48  ;;  %v1407_v53 = vmul.f32 %v1406_v52, %v1399_v57  ;;  %p2022_p2 = pneg %p2021_p11 }
 0x28f   : > { %v1374_v8 = vadd.f32 %v1372_v7, %v1359_v28 }
 0x290   : > { %v1369_v9 = vpop.permute.xlu1 %1368  ;;  %v1394_v40 = vadd.f32 %v1392_v46, %v1389_v44  ;;  %v1511_v46 = vstv %s3384_s12  ;;  %p2029_p6 = pnand %p2028_p1, %p2022_p2 }
 0x291   : > { %v1403_v1 = vpop.permute.xlu0 %1402  ;;  %v1377_v25 = vmul.f32 %v1375_v30, %v1369_v9  ;;  %v1471_v30 = vstv %s3371_s18 }
 0x292   : > { %v1409_v50 = vadd.f32 %v1407_v53, %v1394_v40  ;;  %v1412_v16 = vmul.f32 %v1411_v4, %v1403_v1 }
 0x293   : > { %v1379_v62 = vadd.f32 %v1377_v25, %v1374_v8 }
 0x294   : > { %v1401_v15 = vpop.permute.xlu1 %1400  ;;  %v1414_v12 = vadd.f32 %v1412_v16, %v1409_v50 }
 0x295   : > { %v1419_v23 = vpop.permute.xlu0 %1418  ;;  %v1390_v56 = vadd.f32 %v1388_v59, %v1379_v62  ;;  %v1408_v57 = vmul.f32 %v1406_v52, %v1401_v15 }
 0x296   : > { %v1427_v63 = vmul.f32 %v1426_v61, %v1419_v23 }
 0x297   : > { %v1395_v29 = vadd.f32 %v1393_v39, %v1390_v56 }
 0x298   : > { %v1405_v55 = vpop.permute.xlu1 %1404  ;;  %v1429_v36 = vadd.f32 %v1427_v63, %v1414_v12 }
 0x299   : > { %v1423_v19 = vpop.permute.xlu0 %1422  ;;  %v1410_v49 = vadd.f32 %v1408_v57, %v1395_v29  ;;  %v1413_v38 = vmul.f32 %v1411_v4, %v1405_v55 }
 0x29a   : > { %v1432_v3 = vmul.f32 %v1431_v32, %v1423_v19 }
 0x29b   : > { %v1415_v10 = vadd.f32 %v1413_v38, %v1410_v49 }
 0x29c   : > { %v1421_v41 = vpop.permute.xlu1 %1420  ;;  %v1434_v26 = vadd.f32 %v1432_v3, %v1429_v36 }
 0x29d   : > { %v1439_v6 = vpop.permute.xlu0 %1438  ;;  %v1428_v18 = vmul.f32 %v1426_v61, %v1421_v41 }
 0x29e   : > { %v1447_v20 = vmul.f32 %v1446_v33, %v1439_v6 }
 0x29f   : > { %v1430_v47 = vadd.f32 %v1428_v18, %v1415_v10 }
 0x2a0   : > { %v1425_v42 = vpop.permute.xlu1 %1424  ;;  %v1449_v31 = vadd.f32 %v1447_v20, %v1434_v26 }
 0x2a1   : > { %v1443_v13 = vpop.permute.xlu0 %1442  ;;  %v1433_v54 = vmul.f32 %v1431_v32, %v1425_v42 }
 0x2a2   : > { %v1452_v9 = vmul.f32 %v1451_v21, %v1443_v13 }
 0x2a3   : > { %v1435_v48 = vadd.f32 %v1433_v54, %v1430_v47 }
 0x2a4   : > { %v1441_v58 = vpop.permute.xlu1 %1440  ;;  %v1454_v43 = vadd.f32 %v1452_v9, %v1449_v31 }
 0x2a5   : > { %v1459_v2 = vpop.permute.xlu0 %1458  ;;  %v1448_v23 = vmul.f32 %v1446_v33, %v1441_v58 }
 0x2a6   : > { %v1467_v27 = vmul.f32 %v1466_v0, %v1459_v2 }
 0x2a7   : > { %v1450_v28 = vadd.f32 %v1448_v23, %v1435_v48 }
 0x2a8   : > { %v1445_v35 = vpop.permute.xlu1 %1444  ;;  %v1469_v60 = vadd.f32 %v1467_v27, %v1454_v43 }
 0x2a9   : > { %v1463_v24 = vpop.permute.xlu0 %1462  ;;  %v1453_v55 = vmul.f32 %v1451_v21, %v1445_v35 }
 0x2aa   : > { %v1472_v15 = vmul.f32 %v1471_v30, %v1463_v24 }
 0x2ab   : > { %v1455_v8 = vadd.f32 %v1453_v55, %v1450_v28 }
 0x2ac   : > { %v1461_v37 = vpop.permute.xlu1 %1460  ;;  %v1474_v7 = vadd.f32 %v1472_v15, %v1469_v60 }
 0x2ad   : > { %v1479_v1 = vpop.permute.xlu0 %1478  ;;  %v1468_v25 = vmul.f32 %v1466_v0, %v1461_v37 }
 0x2ae   : > { %v1487_v5 = vmul.f32 %v1486_v14, %v1479_v1 }
 0x2af   : > { %v1470_v40 = vadd.f32 %v1468_v25, %v1455_v8 }
 0x2b0   : > { %v1465_v51 = vpop.permute.xlu1 %1464  ;;  %v1489_v44 = vadd.f32 %v1487_v5, %v1474_v7 }
 0x2b1   : > { %v1483_v17 = vpop.permute.xlu0 %1482  ;;  %v1473_v6 = vmul.f32 %v1471_v30, %v1465_v51 }
 0x2b2   : > { %v1492_v11 = vmul.f32 %v1491_v34, %v1483_v17 }
 0x2b3   : > { %v1475_v53 = vadd.f32 %v1473_v6, %v1470_v40 }
 0x2b4   : > { %v1481_v19 = vpop.permute.xlu1 %1480  ;;  %v1494_v62 = vadd.f32 %v1492_v11, %v1489_v44 }
 0x2b5   : > { %v1499_v22 = vpop.permute.xlu0 %1498  ;;  %v1488_v42 = vmul.f32 %v1486_v14, %v1481_v19 }
 0x2b6   : > { %v1507_v41 = vmul.f32 %v1506_v45, %v1499_v22 }
 0x2b7   : > { %v1490_v16 = vadd.f32 %v1488_v42, %v1475_v53 }
 0x2b8   : > { %v1485_v52 = vpop.permute.xlu1 %1484  ;;  %v1509_v4 = vadd.f32 %v1507_v41, %v1494_v62 }
 0x2b9   : > { %v1503_v59 = vpop.permute.xlu0 %1502  ;;  %v1493_v56 = vmul.f32 %v1491_v34, %v1485_v52 }
 0x2ba   : > { %v1512_v13 = vmul.f32 %v1511_v46, %v1503_v59 }
 0x2bb   : > { %v1495_v32 = vadd.f32 %v1493_v56, %v1490_v16 }
 0x2bc   : > { %v1501_v61 = vpop.permute.xlu1 %1500  ;;  %v1514_v50 = vadd.f32 %v1512_v13, %v1509_v4 }
 0x2bd   : > { %v1508_v58 = vmul.f32 %v1506_v45, %v1501_v61 }
 0x2be   : > { %v1806_v39 = vmul.f32 -1.442695, %v1514_v50 }
 0x2bf   : > { %v1510_v63 = vadd.f32 %v1508_v58, %v1495_v32 }
 0x2c0   : > { %1912 = vpow2.f32 %v1806_v39  ;;  %v1505_v2 = vpop.permute.xlu1 %1504 }
 0x2c1   : > { %v1513_v29 = vmul.f32 %v1511_v46, %v1505_v2 }
 0x2c3   : > { %v1515_v33 = vadd.f32 %v1513_v29, %v1510_v63 }
 0x2c5   : > { %v1807_v12 = vmul.f32 -1.442695, %v1515_v33 }
 0x2c7   : > { %1914 = vpow2.f32 %v1807_v12 }
 0x2cd   : > { %v1913_v3 = vpop.eup %1912 }
 0x2ce   : > { %v1522_v35 = vadd.f32 1.0, %v1913_v3 }
 0x2d0   : > { %1916 = vrcp.f32 %v1522_v35 }
 0x2d4   : > { %v1915_v57 = vpop.eup %1914 }
 0x2d5   : > { %v1523_v21 = vadd.f32 1.0, %v1915_v57 }
 0x2d7   : > { %1918 = vrcp.f32 %v1523_v21 }
 0x2dd   : > { %v1917_v24 = vpop.eup %1916 }
 0x2de   : > { %1528 = vst [vmem:[%s361_s26] sm:$0xff] %v1917_v24 }
 0x2e4   : > { %v1919_v36 = vpop.eup %1918 }
 0x2e5   : > { %1529 = vst [vmem:[%s361_s26 + $0x8] sm:$0xff] %v1919_v36 }
 0x2e6   : > { %2032 = shalt.err (!%p2029_p6)
}
 0x2e7   : > { %s2033_s13 = scalar_lea.hbm %s3394_s15, 256  ;;  %s2037_s18 = scalar_lea.hbm %s3449_s5, 512 }
 0x2e8   : > { %p2034_p9 = scmp.ne.s32.totalorder %s3394_s15, %s2033_s13  ;;  %p2038_p13 = scmp.lt.s32.totalorder %s3394_s15, %s3449_s5 }
 0x2e9   : > { %p2039_p10 = scmp.lt.s32.totalorder %s2037_s18, %s2033_s13 }
 0x2ea   : > { %p2035_p3 = pnand %p2034_p9, %p2255_p12 }
 0x2eb   : > { %p2040_p0 = por %p2039_p10, %p2038_p13 }
 0x2ec   : > { %p2036_p4 = pneg %p2035_p3 }
 0x2ee   : > { %p2041_p7 = pnand %p2040_p0, %p2036_p4 }
 0x2f0   : > { %2044 = shalt.err (!%p2041_p7)
}
 0x2f1   : > { %s2124_s1 = smov 128   ;;  %s2125_s12 = smov 8  }
 0x2f2   : > { %1827 = dma.vmem_to_hbm [thread:$0]  (%p2255_p12), %s3396_s30, 256, %s3394_s15, %s1531_s16, %s2124_s1, %s2124_s1, %s2125_s12  }
 0x2f3 PF: > { %s1559_s28 = sand.u32 1, %s2087_s20   ;;  %p3482_p11 = scmp.ne.s32.totalorder %s3467_s11, 0 }
 0x2f4   : > { %p3483_p2 = scmp.ge.s32.totalorder %s2107_s25, 2  ;;  %s1560_s26 = scalar_lea.sflag [#allocation11], %s1559_s28 }
 0x2f6   : > { %p1844_p5 = pnand %p3483_p2, %p3482_p11 }
 0x2f8   : > { %p1845_p8 = pneg %p1844_p5 }
 0x2fa   : > { %2082 = dma.done.wait (%p1845_p8), %s1560_s26, 256  }
 0x2fb   : > { %2084 = vsyncadd (%p1845_p8), %s1560_s26, 4294967040  ;;  %s26_s25 = sadd.s32 1, %s2107_s25   ;;  %s3484_s10 = sld [smem:[#allocation22_spill]] }
 0x2fc   : > { %p23_p1 = scmp.ge.s32.totalorder %s26_s25, 4   ;;  %s3485_s20 = smov %s2091_s21 }
 0x2fd   : > { %s3486_s21 = smov %s2095_s22  ;;  %s3487_s22 = smov %s2216_s7 }
 0x2fe   : > { %s3488_s23 = smov %s2103_s24  ;;  %25 = sbr.rel (!%p23_p1) target bundleno = 14 (0xe), region = 126 }
 0x301   : > { %s3489_s24 = smov %s3484_s10 }
 0x303   :  { %1565 = vsyncpa [#allocation10], 1 }
 0x304   :  { %1567 = vsyncpa [#allocation10 + $0x1], 1 }
 0x305   :  { %1568 = vsyncpa [#allocation15], 1 }
 0x306   :  { %1570 = vsyncpa [#allocation15 + $0x1], 1 }
 0x307   :  { %1571 = vsyncpa [#allocation11], 1 }
 0x308   :  { %1573 = vsyncpa [#allocation11 + $0x1], 1 }
 0x309   :  { %1574 = vsyncpa [#allocation12], 1 }
 0x30a   :  { %1576 = vsyncpa [#allocation12 + $0x1], 1 }

</bundles_post_ra>
